<compile_context>
chip_gen: v7x
topology: tpu7x:2x2x1
jax: 0.10.0
libtpu: 0.0.40
codegen_flags: <defaults>
</compile_context>

<pallas_src>
import functools
import math

import jax
import jax.numpy as jnp
from jax.experimental import pallas as pl
from jax.experimental.pallas import tpu as pltpu


_VMEM_LIMIT = 40 * 1024 * 1024   # leaves headroom on v7x (64 MiB physical)


# --------------------------------------------------------------------------
# tiling helpers
# --------------------------------------------------------------------------
def _pick_tile(dim, pref, aligns):
    """Largest divisor of `dim` that is <= `pref` and a multiple of one of
    `aligns` (tried in priority order, e.g. (256, 128) to favour the 256-wide
    v6e/v7x MXU); falls back to the full dimension (always legal)."""
    if dim <= pref:
        return dim
    for align in aligns:
        t = (pref // align) * align
        while t >= align:
            if dim % t == 0:
                return t
            t -= align
    return dim


def _split_for_megacore(M, N, tm, tn):
    """If the (parallel) grid would be 1x1, halve one tile so v7x's two
    TensorCores both get work.  Keeps 128-lane / 16-sublane alignment."""
    if (M // tm) * (N // tn) > 1:
        return tm, tn
    if tn % 256 == 0:
        return tm, tn // 2
    if tm % 32 == 0:
        return tm // 2, tn
    return tm, tn


# --------------------------------------------------------------------------
# Tiled matmul (+ optional bias, + optional ReLU)
# --------------------------------------------------------------------------
def _mm_nk1_kernel(*refs, relu, has_bias):
    # single-K-block specialization: no accumulator scratch, no pl.when phases
    if has_bias:
        x_ref, w_ref, b_ref, o_ref = refs
    else:
        x_ref, w_ref, o_ref = refs
        b_ref = None
    out = jnp.dot(x_ref[...], w_ref[...], preferred_element_type=jnp.float32)
    if has_bias:
        out = out + b_ref[...]
    if relu:
        out = jnp.maximum(out, 0.0)
    o_ref[...] = out.astype(o_ref.dtype)


def _mm_acc_kernel(*refs, relu, has_bias, n_k):
    if has_bias:
        x_ref, w_ref, b_ref, o_ref, acc_ref = refs
    else:
        x_ref, w_ref, o_ref, acc_ref = refs
        b_ref = None
    k = pl.program_id(2)

    @pl.when(k == 0)
    def _init():
        acc_ref[...] = jnp.zeros_like(acc_ref)

    acc_ref[...] += jnp.dot(x_ref[...], w_ref[...],
                            preferred_element_type=jnp.float32)

    @pl.when(k == n_k - 1)
    def _store():
        out = acc_ref[...]
        if has_bias:
            out = out + b_ref[...]
        if relu:
            out = jnp.maximum(out, 0.0)
        o_ref[...] = out.astype(o_ref.dtype)


def matmul_bias(x, w, b=None, *, relu=False, out_dtype=jnp.bfloat16,
                tm=256, tn=512, tk=512):
    """o = [relu](x @ w [+ b]).  x: (M, K) bf16; w: (K, N) bf16, pre-transposed
    to (in_features, out_features)."""
    M, K = x.shape
    K2, N = w.shape
    assert K == K2
    has_bias = b is not None
    x = x.astype(jnp.bfloat16)
    w = w.astype(jnp.bfloat16)

    tm = _pick_tile(M, tm, (16,))
    tn = _pick_tile(N, tn, (256, 128))
    tk = _pick_tile(K, tk, (256, 128))
    tm, tn = _split_for_megacore(M, N, tm, tn)
    n_k = K // tk

    operands = [x, w]
    if has_bias:
        operands.append(b.reshape(1, N).astype(jnp.float32))

    if n_k == 1:
        in_specs = [pl.BlockSpec((tm, tk), lambda i, j: (i, 0)),
                    pl.BlockSpec((tk, tn), lambda i, j: (0, j))]
        if has_bias:
            in_specs.append(pl.BlockSpec((1, tn), lambda i, j: (0, j)))
        return pl.pallas_call(
            functools.partial(_mm_nk1_kernel, relu=relu, has_bias=has_bias),
            out_shape=jax.ShapeDtypeStruct((M, N), out_dtype),
            grid=(M // tm, N // tn),
            in_specs=in_specs,
            out_specs=pl.BlockSpec((tm, tn), lambda i, j: (i, j)),
            compiler_params=pltpu.CompilerParams(
                dimension_semantics=("parallel", "parallel"),
                vmem_limit_bytes=_VMEM_LIMIT),
        )(*operands)

    in_specs = [pl.BlockSpec((tm, tk), lambda i, j, k: (i, k)),
                pl.BlockSpec((tk, tn), lambda i, j, k: (k, j))]
    if has_bias:
        in_specs.append(pl.BlockSpec((1, tn), lambda i, j, k: (0, j)))
    return pl.pallas_call(
        functools.partial(_mm_acc_kernel, relu=relu, has_bias=has_bias,
                          n_k=n_k),
        out_shape=jax.ShapeDtypeStruct((M, N), out_dtype),
        grid=(M // tm, N // tn, n_k),
        in_specs=in_specs,
        out_specs=pl.BlockSpec((tm, tn), lambda i, j, k: (i, j)),
        scratch_shapes=[pltpu.VMEM((tm, tn), jnp.float32)],
        compiler_params=pltpu.CompilerParams(
            dimension_semantics=("parallel", "parallel", "arbitrary"),
            vmem_limit_bytes=_VMEM_LIMIT),
    )(*operands)


# --------------------------------------------------------------------------
# Tiled matmul + bias with fused residual-add + LayerNorm epilogue
# (N = d_model stays untiled so the LN row reduction lives in-kernel)
# --------------------------------------------------------------------------
def _ln_epilogue(z, g, bt, eps, out_dtype):
    mean = jnp.mean(z, axis=-1, keepdims=True)
    zc = z - mean
    var = jnp.mean(zc * zc, axis=-1, keepdims=True)
    zn = zc * jax.lax.rsqrt(var + eps)
    return (zn * g + bt).astype(out_dtype)


def _mm_res_ln_nk1_kernel(x_ref, w_ref, b_ref, r_ref, g_ref, bt_ref, o_ref,
                          *, eps):
    z = jnp.dot(x_ref[...], w_ref[...], preferred_element_type=jnp.float32)
    z = z + b_ref[...] + r_ref[...].astype(jnp.float32)
    o_ref[...] = _ln_epilogue(z, g_ref[...], bt_ref[...], eps, o_ref.dtype)


def _mm_res_ln_acc_kernel(x_ref, w_ref, b_ref, r_ref, g_ref, bt_ref, o_ref,
                          acc_ref, *, n_k, eps):
    k = pl.program_id(1)

    @pl.when(k == 0)
    def _init():
        acc_ref[...] = jnp.zeros_like(acc_ref)

    acc_ref[...] += jnp.dot(x_ref[...], w_ref[...],
                            preferred_element_type=jnp.float32)

    @pl.when(k == n_k - 1)
    def _finalize():
        z = acc_ref[...] + b_ref[...] + r_ref[...].astype(jnp.float32)
        o_ref[...] = _ln_epilogue(z, g_ref[...], bt_ref[...], eps, o_ref.dtype)


def matmul_bias_residual_layernorm(x, w, b, residual, gamma, beta,
                                   *, eps=1e-5, tm=256, tk=512):
    """LayerNorm(residual + x @ w + b); LN math in f32, bf16 output."""
    M, K = x.shape
    K2, N = w.shape
    assert K == K2 and residual.shape == (M, N)
    x = x.astype(jnp.bfloat16)
    w = w.astype(jnp.bfloat16)
    residual = residual.astype(jnp.bfloat16)

    tm = _pick_tile(M, tm, (16,))
    tk = _pick_tile(K, tk, (256, 128))
    if M // tm == 1 and tm % 32 == 0:
        tm //= 2                     # give both v7x TensorCores work
    n_k = K // tk

    b2 = b.reshape(1, N).astype(jnp.float32)
    g2 = gamma.reshape(1, N).astype(jnp.float32)
    bt2 = beta.reshape(1, N).astype(jnp.float32)

    if n_k == 1:
        return pl.pallas_call(
            functools.partial(_mm_res_ln_nk1_kernel, eps=eps),
            out_shape=jax.ShapeDtypeStruct((M, N), jnp.bfloat16),
            grid=(M // tm,),
            in_specs=[
                pl.BlockSpec((tm, tk), lambda i: (i, 0)),
                pl.BlockSpec((tk, N), lambda i: (0, 0)),
                pl.BlockSpec((1, N), lambda i: (0, 0)),
                pl.BlockSpec((tm, N), lambda i: (i, 0)),   # residual stream
                pl.BlockSpec((1, N), lambda i: (0, 0)),
                pl.BlockSpec((1, N), lambda i: (0, 0)),
            ],
            out_specs=pl.BlockSpec((tm, N), lambda i: (i, 0)),
            compiler_params=pltpu.CompilerParams(
                dimension_semantics=("parallel",),
                vmem_limit_bytes=_VMEM_LIMIT),
        )(x, w, b2, residual, g2, bt2)

    return pl.pallas_call(
        functools.partial(_mm_res_ln_acc_kernel, n_k=n_k, eps=eps),
        out_shape=jax.ShapeDtypeStruct((M, N), jnp.bfloat16),
        grid=(M // tm, n_k),
        in_specs=[
            pl.BlockSpec((tm, tk), lambda i, k: (i, k)),
            pl.BlockSpec((tk, N), lambda i, k: (k, 0)),
            pl.BlockSpec((1, N), lambda i, k: (0, 0)),
            pl.BlockSpec((tm, N), lambda i, k: (i, 0)),
            pl.BlockSpec((1, N), lambda i, k: (0, 0)),
            pl.BlockSpec((1, N), lambda i, k: (0, 0)),
        ],
        out_specs=pl.BlockSpec((tm, N), lambda i, k: (i, 0)),
        scratch_shapes=[pltpu.VMEM((tm, N), jnp.float32)],
        compiler_params=pltpu.CompilerParams(
            dimension_semantics=("parallel", "arbitrary"),
            vmem_limit_bytes=_VMEM_LIMIT),
    )(x, w, b2, residual, g2, bt2)


# --------------------------------------------------------------------------
# Fused MLP block: LayerNorm(residual + lin2(relu(lin1(x)))) in ONE kernel.
# The (tm, d_mlp) intermediate never leaves VMEM.
# --------------------------------------------------------------------------
def _mlp_fused_kernel(x_ref, w1_ref, b1_ref, w2_ref, b2_ref, r_ref,
                      g_ref, bt_ref, o_ref, *, eps):
    h = jnp.dot(x_ref[...], w1_ref[...], preferred_element_type=jnp.float32)
    h = jnp.maximum(h + b1_ref[...], 0.0).astype(jnp.bfloat16)
    z = jnp.dot(h, w2_ref[...], preferred_element_type=jnp.float32)
    z = z + b2_ref[...] + r_ref[...].astype(jnp.float32)
    o_ref[...] = _ln_epilogue(z, g_ref[...], bt_ref[...], eps, o_ref.dtype)
    # TODO(synk): for very large d_mlp, tile the lin2 K axis in-kernel with
    # pltpu.emit_pipeline instead of holding the full (d_model, d_mlp) weights.


def mlp_block(x, w1, b1, w2, b2, residual, gamma, beta, *, eps=1e-5, tm=256):
    M, D = x.shape
    D2, Mlp = w1.shape
    assert D == D2 and w2.shape == (Mlp, D) and residual.shape == (M, D)
    x = x.astype(jnp.bfloat16)
    residual = residual.astype(jnp.bfloat16)

    tm = _pick_tile(M, tm, (16,))
    if M // tm == 1 and tm % 32 == 0:
        tm //= 2

    b1r = b1.reshape(1, Mlp).astype(jnp.float32)
    b2r = b2.reshape(1, D).astype(jnp.float32)
    g2 = gamma.reshape(1, D).astype(jnp.float32)
    bt2 = beta.reshape(1, D).astype(jnp.float32)
    return pl.pallas_call(
        functools.partial(_mlp_fused_kernel, eps=eps),
        out_shape=jax.ShapeDtypeStruct((M, D), jnp.bfloat16),
        grid=(M // tm,),
        in_specs=[
            pl.BlockSpec((tm, D), lambda i: (i, 0)),
            pl.BlockSpec((D, Mlp), lambda i: (0, 0)),
            pl.BlockSpec((1, Mlp), lambda i: (0, 0)),
            pl.BlockSpec((Mlp, D), lambda i: (0, 0)),
            pl.BlockSpec((1, D), lambda i: (0, 0)),
            pl.BlockSpec((tm, D), lambda i: (i, 0)),     # residual stream
            pl.BlockSpec((1, D), lambda i: (0, 0)),
            pl.BlockSpec((1, D), lambda i: (0, 0)),
        ],
        out_specs=pl.BlockSpec((tm, D), lambda i: (i, 0)),
        compiler_params=pltpu.CompilerParams(
            dimension_semantics=("parallel",),
            vmem_limit_bytes=_VMEM_LIMIT),
    )(x, w1, b1r, w2, b2r, residual, g2, bt2)


# --------------------------------------------------------------------------
# Plain row-tiled LayerNorm (final ln_f); bf16 out, f32 math
# --------------------------------------------------------------------------
def _layernorm_kernel(x_ref, g_ref, b_ref, o_ref, *, eps):
    z = x_ref[...].astype(jnp.float32)
    o_ref[...] = _ln_epilogue(z, g_ref[...], b_ref[...], eps, o_ref.dtype)


def layernorm(x, gamma, beta, *, eps=1e-5, tm=512):
    M, D = x.shape
    x = x.astype(jnp.bfloat16)
    tm = _pick_tile(M, tm, (16,))
    if M // tm == 1 and tm % 32 == 0:
        tm //= 2
    g2 = gamma.reshape(1, D).astype(jnp.float32)
    b2 = beta.reshape(1, D).astype(jnp.float32)
    return pl.pallas_call(
        functools.partial(_layernorm_kernel, eps=eps),
        out_shape=jax.ShapeDtypeStruct((M, D), jnp.bfloat16),
        grid=(M // tm,),
        in_specs=[
            pl.BlockSpec((tm, D), lambda i: (i, 0)),
            pl.BlockSpec((1, D), lambda i: (0, 0)),
            pl.BlockSpec((1, D), lambda i: (0, 0)),
        ],
        out_specs=pl.BlockSpec((tm, D), lambda i: (i, 0)),
        compiler_params=pltpu.CompilerParams(
            dimension_semantics=("parallel",)),
    )(x, g2, b2)


# --------------------------------------------------------------------------
# Causal multi-head attention.  One grid step per batch element; all heads are
# processed with batched-over-head einsums (no per-head 32-lane slicing, no
# concat relayout).  Softmax scale is folded into q; reciprocal uses the EUP.
# --------------------------------------------------------------------------
def _attn_kernel(q_ref, k_ref, v_ref, o_ref, *, scale):
    q = q_ref[0] * scale                       # (H, S, Dh) bf16, O(S*Dh) scale
    k = k_ref[0]
    v = v_ref[0]
    s = jnp.einsum('hqd,hkd->hqk', q, k,
                   preferred_element_type=jnp.float32)   # (H, S, S) f32
    S = s.shape[-1]
    row = jax.lax.broadcasted_iota(jnp.int32, (1, S, S), 1)
    col = jax.lax.broadcasted_iota(jnp.int32, (1, S, S), 2)
    s = jnp.where(col > row, -1e30, s)         # finite mask (no -inf -> NaN)
    m = jnp.max(s, axis=-1, keepdims=True)
    p = jnp.exp(s - m)
    denom = jnp.sum(p, axis=-1, keepdims=True)
    p = p * pl.reciprocal(denom, approx=True)
    o = jnp.einsum('hqk,hkd->hqd', p.astype(v.dtype), v,
                   preferred_element_type=jnp.float32)
    o_ref[0] = o.astype(o_ref.dtype)
    # TODO(synk): for long sequences switch to a flash-style KV-tiled grid
    # (B, q_tiles, kv_tiles) with online-softmax scratch and causal tile skip.


def causal_attention(qkv, B, S, n_heads, d_head):
    """qkv: (B*S, 3*D) bf16 packed [q|k|v] -> (B*S, D) bf16."""
    D = n_heads * d_head
    scale = 1.0 / math.sqrt(d_head)            # Python float baked in
    qkv5 = qkv.reshape(B, S, 3, n_heads, d_head)
    q = jnp.transpose(qkv5[:, :, 0], (0, 2, 1, 3))   # (B, H, S, Dh)
    k = jnp.transpose(qkv5[:, :, 1], (0, 2, 1, 3))
    v = jnp.transpose(qkv5[:, :, 2], (0, 2, 1, 3))
    spec = pl.BlockSpec((1, n_heads, S, d_head), lambda b: (b, 0, 0, 0))
    out = pl.pallas_call(
        functools.partial(_attn_kernel, scale=scale),
        out_shape=jax.ShapeDtypeStruct((B, n_heads, S, d_head), jnp.bfloat16),
        grid=(B,),
        in_specs=[spec, spec, spec],
        out_specs=spec,
        compiler_params=pltpu.CompilerParams(
            dimension_semantics=("parallel",),
            vmem_limit_bytes=_VMEM_LIMIT),
    )(q, k, v)
    return jnp.transpose(out, (0, 2, 1, 3)).reshape(B * S, D)


# --------------------------------------------------------------------------
# GPT2 model (parameter init + forward glue)
# --------------------------------------------------------------------------
class Config:
    # Small TPU-friendly shapes (lane dim 128) consistent with the module.
    d_model = 128
    seq_len = 16
    d_mlp = 256
    d_head = 32
    n_heads = 4
    n_layers = 2
    d_vocab = 256


def init_params(key, cfg):
    D, M, V, Smax, L = (cfg.d_model, cfg.d_mlp, cfg.d_vocab,
                        cfg.seq_len, cfg.n_layers)
    keys = jax.random.split(key, 3 + 4 * L)

    def w(k, shape):
        # weights pre-transposed to (in_features, out_features), stored bf16
        # for the MXU path (accumulation stays f32 in-kernel).
        return (0.02 * jax.random.normal(k, shape)).astype(jnp.bfloat16)

    params = {
        "embed": (0.02 * jax.random.normal(keys[0], (V, D))).astype(jnp.float32),
        "pos_embed": (0.02 * jax.random.normal(keys[1], (Smax, D))).astype(jnp.float32),
        "ln_f_g": jnp.ones((D,), jnp.float32),
        "ln_f_b": jnp.zeros((D,), jnp.float32),
        "unembed_w": w(keys[2], (D, V)),        # Linear(d_model, d_vocab, bias=False)
        "blocks": [],
    }
    for l in range(L):
        kq, ko, k1, k2 = keys[3 + 4 * l: 7 + 4 * l]
        blk = {
            "in_proj_w": w(kq, (D, 3 * D)),     # packed QKV, (in, out)
            "in_proj_b": jnp.zeros((3 * D,), jnp.float32),
            "out_proj_w": w(ko, (D, D)),
            "out_proj_b": jnp.zeros((D,), jnp.float32),
            "ln1_g": jnp.ones((D,), jnp.float32),
            "ln1_b": jnp.zeros((D,), jnp.float32),
            "lin1_w": w(k1, (D, M)),
            "lin1_b": jnp.zeros((M,), jnp.float32),
            "lin2_w": w(k2, (M, D)),
            "lin2_b": jnp.zeros((D,), jnp.float32),
            "ln2_g": jnp.ones((D,), jnp.float32),
            "ln2_b": jnp.zeros((D,), jnp.float32),
        }
        params["blocks"].append(blk)
    return params


def transformer_block(x2d, B, S, cfg, blk):
    D, H, Dh = cfg.d_model, cfg.n_heads, cfg.d_head

    # ---- causal multi-head self-attention (nn.MultiheadAttention semantics) ----
    qkv = matmul_bias(x2d, blk["in_proj_w"], blk["in_proj_b"])     # (B*S, 3D) bf16
    attn = causal_attention(qkv, B, S, H, Dh)                      # (B*S, D) bf16

    # out-proj matmul with fused bias + residual-add + LayerNorm (post-LN)
    x2d = matmul_bias_residual_layernorm(
        attn, blk["out_proj_w"], blk["out_proj_b"],
        x2d, blk["ln1_g"], blk["ln1_b"])

    # ---- MLP: Linear -> ReLU -> Linear + residual + LayerNorm, fully fused ----
    x2d = mlp_block(x2d, blk["lin1_w"], blk["lin1_b"],
                    blk["lin2_w"], blk["lin2_b"],
                    x2d, blk["ln2_g"], blk["ln2_b"])
    return x2d


def gpt2_forward(params, tokens, cfg):
    # tokens: (B, S) int32
    B, S = tokens.shape
    D, V = cfg.d_model, cfg.d_vocab

    # token + positional embedding (gather kept as plain-JAX glue)
    x = jnp.take(params["embed"], tokens, axis=0)                  # (B, S, D)
    x = x + params["pos_embed"][:S][None, :, :]
    x2d = x.reshape(B * S, D).astype(jnp.bfloat16)                 # bf16 stream

    for blk in params["blocks"]:
        x2d = transformer_block(x2d, B, S, cfg, blk)

    x2d = layernorm(x2d, params["ln_f_g"], params["ln_f_b"])       # ln_f (bf16)
    logits = matmul_bias(x2d, params["unembed_w"], None,
                         out_dtype=jnp.float32)                    # no bias DMA
    return logits.reshape(B, S, V)


# TODO(synk): GPT2TokenizerFast encode/decode and the autoregressive `yap`
# sampling loop are host-side string/control logic with no Pallas equivalent;
# the forward pass operates on integer token ids directly.

if __name__ == "__main__":
    cfg = Config()
    key = jax.random.PRNGKey(0)
    pkey, tkey = jax.random.split(key)

    params = init_params(pkey, cfg)
    B, S = 2, 16
    tokens = jax.random.randint(tkey, (B, S), 0, cfg.d_vocab, dtype=jnp.int32)

    fwd = jax.jit(functools.partial(gpt2_forward, cfg=cfg))
    logits = fwd(params, tokens)
    jax.block_until_ready(logits)
    assert logits.shape == (B, S, cfg.d_vocab)
    assert logits.dtype == jnp.float32
    assert bool(jnp.all(jnp.isfinite(logits)))
    print("KERNEL_OK")
</pallas_src>

<mosaic_0001>
module attributes {stable_mosaic.version = 11 : i64} {
  func.func @_mm_nk1_kernel(%arg0: i32, %arg1: i32, %arg2: memref<16x128xbf16, #tpu.memory_space<vmem>>, %arg3: memref<128x384xbf16, #tpu.memory_space<vmem>>, %arg4: memref<1x384xf32, #tpu.memory_space<vmem>>, %arg5: memref<16x384xbf16, #tpu.memory_space<vmem>>) attributes {dimension_semantics = [#tpu.dimension_semantics<parallel>, #tpu.dimension_semantics<parallel>], iteration_bounds = array<i64: 2, 1>, scalar_prefetch = 0 : i64, scratch_operands = 0 : i64, tpu.core_type = #tpu.core_type<tc>, window_params = [{transform_indices = @transform_0, window_bounds = array<i64: 16, 128>}, {transform_indices = @transform_1, window_bounds = array<i64: 128, 384>}, {transform_indices = @transform_2, window_bounds = array<i64: 1, 384>}, {transform_indices = @transform_3, window_bounds = array<i64: 16, 384>}]} {
    %c0 = arith.constant 0 : index
    %c0_0 = arith.constant 0 : index
    %0 = vector.load %arg2[%c0, %c0_0] : memref<16x128xbf16, #tpu.memory_space<vmem>>, vector<16x128xbf16>
    %c0_1 = arith.constant 0 : index
    %c0_2 = arith.constant 0 : index
    %1 = vector.load %arg3[%c0_1, %c0_2] : memref<128x384xbf16, #tpu.memory_space<vmem>>, vector<128x384xbf16>
    %cst = arith.constant dense<0.000000e+00> : vector<16x384xf32>
    %2 = tpu.matmul %0, %1, %cst {dimension_numbers = #tpu.dot_dimension_numbers<[1], [0], [0], [1], [0, 0, 1, 1], [], []>} : vector<16x128xbf16>, vector<128x384xbf16>, vector<16x384xf32> -> vector<16x384xf32>
    %c0_3 = arith.constant 0 : index
    %c0_4 = arith.constant 0 : index
    %3 = vector.load %arg4[%c0_3, %c0_4] : memref<1x384xf32, #tpu.memory_space<vmem>>, vector<1x384xf32>
    %4 = vector.broadcast %3 : vector<1x384xf32> to vector<16x384xf32>
    %5 = arith.addf %2, %4 : vector<16x384xf32>
    %6 = arith.truncf %5 : vector<16x384xf32> to vector<16x384xbf16>
    %c0_5 = arith.constant 0 : index
    %c0_6 = arith.constant 0 : index
    %7 = vector.load %arg5[%c0_5, %c0_6] : memref<16x384xbf16, #tpu.memory_space<vmem>>, vector<16x384xbf16>
    tpu.vector_store %arg5[%c0_5, %c0_6], %6 {strides = array<i32>} : memref<16x384xbf16, #tpu.memory_space<vmem>>, vector<16x384xbf16>,
    return
  }
  func.func @transform_0(%arg0: i32, %arg1: i32) -> (i32, i32) {
    %c0_i32 = arith.constant 0 : i32
    %c0_i32_0 = arith.constant 0 : i32
    return %arg0, %c0_i32 : i32, i32
  }
  func.func @transform_1(%arg0: i32, %arg1: i32) -> (i32, i32) {
    %c0_i32 = arith.constant 0 : i32
    %c0_i32_0 = arith.constant 0 : i32
    return %c0_i32, %arg1 : i32, i32
  }
  func.func @transform_2(%arg0: i32, %arg1: i32) -> (i32, i32) {
    %c0_i32 = arith.constant 0 : i32
    %c0_i32_0 = arith.constant 0 : i32
    return %c0_i32, %arg1 : i32, i32
  }
  func.func @transform_3(%arg0: i32, %arg1: i32) -> (i32, i32) {
    %c0_i32 = arith.constant 0 : i32
    return %arg0, %arg1 : i32, i32
  }
}

module attributes {stable_mosaic.version = 11 : i64} {
  func.func @_attn_kernel(%arg0: i32, %arg1: memref<1x4x16x32xbf16, #tpu.memory_space<vmem>>, %arg2: memref<1x4x16x32xbf16, #tpu.memory_space<vmem>>, %arg3: memref<1x4x16x32xbf16, #tpu.memory_space<vmem>>, %arg4: memref<1x4x16x32xbf16, #tpu.memory_space<vmem>>) attributes {dimension_semantics = [#tpu.dimension_semantics<parallel>], iteration_bounds = array<i64: 2>, scalar_prefetch = 0 : i64, scratch_operands = 0 : i64, tpu.core_type = #tpu.core_type<tc>, window_params = [{transform_indices = @transform_0, window_bounds = array<i64: 1, 4, 16, 32>}, {transform_indices = @transform_1, window_bounds = array<i64: 1, 4, 16, 32>}, {transform_indices = @transform_2, window_bounds = array<i64: 1, 4, 16, 32>}, {transform_indices = @transform_3, window_bounds = array<i64: 1, 4, 16, 32>}]} {
    %c0 = arith.constant 0 : index
    %c0_0 = arith.constant 0 : index
    %c0_1 = arith.constant 0 : index
    %c0_2 = arith.constant 0 : index
    %0 = vector.load %arg1[%c0, %c0_0, %c0_1, %c0_2] : memref<1x4x16x32xbf16, #tpu.memory_space<vmem>>, vector<1x4x16x32xbf16>
    %1 = vector.shape_cast %0 : vector<1x4x16x32xbf16> to vector<4x16x32xbf16>
    %cst = arith.constant 1.767580e-01 : bf16
    %2 = vector.broadcast %cst : bf16 to vector<4x16x32xbf16>
    %3 = arith.mulf %1, %2 : vector<4x16x32xbf16>
    %c0_3 = arith.constant 0 : index
    %c0_4 = arith.constant 0 : index
    %c0_5 = arith.constant 0 : index
    %c0_6 = arith.constant 0 : index
    %4 = vector.load %arg2[%c0_3, %c0_4, %c0_5, %c0_6] : memref<1x4x16x32xbf16, #tpu.memory_space<vmem>>, vector<1x4x16x32xbf16>
    %5 = vector.shape_cast %4 : vector<1x4x16x32xbf16> to vector<4x16x32xbf16>
    %c0_7 = arith.constant 0 : index
    %c0_8 = arith.constant 0 : index
    %c0_9 = arith.constant 0 : index
    %c0_10 = arith.constant 0 : index
    %6 = vector.load %arg3[%c0_7, %c0_8, %c0_9, %c0_10] : memref<1x4x16x32xbf16, #tpu.memory_space<vmem>>, vector<1x4x16x32xbf16>
    %7 = vector.shape_cast %6 : vector<1x4x16x32xbf16> to vector<4x16x32xbf16>
    "tpu.trace_start"() <{level = 10 : i32, message = "hqd,hkd->hqk"}> : () -> ()
    %cst_11 = arith.constant dense<0.000000e+00> : vector<4x16x16xf32>
    %8 = tpu.matmul %3, %5, %cst_11 {dimension_numbers = #tpu.dot_dimension_numbers<[2], [2], [1], [1], [0, 0, 0, 1, 1, 1], [0], [0]>} : vector<4x16x32xbf16>, vector<4x16x32xbf16>, vector<4x16x16xf32> -> vector<4x16x16xf32>
    "tpu.trace_stop"() : () -> ()
    %9 = tpu.iota {dimensions = array<i32: 1>} : vector<1x16x16xi32>
    %10 = tpu.iota {dimensions = array<i32: 2>} : vector<1x16x16xi32>
    %11 = arith.cmpi sgt, %10, %9 : vector<1x16x16xi32>
    %cst_12 = arith.constant -1.000000e+30 : f32
    %12 = vector.shape_cast %11 : vector<1x16x16xi1> to vector<1x16x16xi1>
    %13 = vector.broadcast %12 : vector<1x16x16xi1> to vector<4x16x16xi1>
    %14 = vector.broadcast %cst_12 : f32 to vector<4x16x16xf32>
    %15 = arith.select %13, %14, %8 : vector<4x16x16xi1>, vector<4x16x16xf32>
    %cst_13 = arith.constant dense<0xFF800000> : vector<4x16xf32>
    %16 = vector.multi_reduction <maximumf>, %15, %cst_13 [2] : vector<4x16x16xf32> to vector<4x16xf32>
    %17 = vector.shape_cast %16 : vector<4x16xf32> to vector<4x16x1xf32>
    %18 = vector.broadcast %17 : vector<4x16x1xf32> to vector<4x16x16xf32>
    %19 = arith.subf %15, %18 : vector<4x16x16xf32>
    %20 = math.exp %19 : vector<4x16x16xf32>
    %cst_14 = arith.constant dense<0.000000e+00> : vector<4x16xf32>
    %21 = vector.multi_reduction <add>, %20, %cst_14 [2] : vector<4x16x16xf32> to vector<4x16xf32>
    %22 = vector.shape_cast %21 : vector<4x16xf32> to vector<4x16x1xf32>
    %23 = tpu.reciprocal %22 {approx = true} : vector<4x16x1xf32> -> vector<4x16x1xf32>
    %24 = vector.broadcast %23 : vector<4x16x1xf32> to vector<4x16x16xf32>
    %25 = arith.mulf %20, %24 : vector<4x16x16xf32>
    %26 = arith.truncf %25 : vector<4x16x16xf32> to vector<4x16x16xbf16>
    "tpu.trace_start"() <{level = 10 : i32, message = "hqk,hkd->hqd"}> : () -> ()
    %cst_15 = arith.constant dense<0.000000e+00> : vector<4x16x32xf32>
    %27 = tpu.matmul %26, %7, %cst_15 {dimension_numbers = #tpu.dot_dimension_numbers<[2], [1], [1], [2], [0, 0, 0, 1, 1, 2], [0], [0]>} : vector<4x16x16xbf16>, vector<4x16x32xbf16>, vector<4x16x32xf32> -> vector<4x16x32xf32>
    "tpu.trace_stop"() : () -> ()
    %28 = arith.truncf %27 : vector<4x16x32xf32> to vector<4x16x32xbf16>
    %c0_16 = arith.constant 0 : index
    %c0_17 = arith.constant 0 : index
    %c0_18 = arith.constant 0 : index
    %c0_19 = arith.constant 0 : index
    %29 = vector.load %arg4[%c0_16, %c0_17, %c0_18, %c0_19] : memref<1x4x16x32xbf16, #tpu.memory_space<vmem>>, vector<1x4x16x32xbf16>
    %30 = vector.shape_cast %29 : vector<1x4x16x32xbf16> to vector<4x16x32xbf16>
    %31 = vector.shape_cast %28 : vector<4x16x32xbf16> to vector<1x4x16x32xbf16>
    tpu.vector_store %arg4[%c0_16, %c0_17, %c0_18, %c0_19], %31 {strides = array<i32>} : memref<1x4x16x32xbf16, #tpu.memory_space<vmem>>, vector<1x4x16x32xbf16>,
    return
  }
  func.func @transform_0(%arg0: i32) -> (i32, i32, i32, i32) {
    %c0_i32 = arith.constant 0 : i32
    %c0_i32_0 = arith.constant 0 : i32
    %c0_i32_1 = arith.constant 0 : i32
    %c0_i32_2 = arith.constant 0 : i32
    return %arg0, %c0_i32, %c0_i32_0, %c0_i32_1 : i32, i32, i32, i32
  }
  func.func @transform_1(%arg0: i32) -> (i32, i32, i32, i32) {
    %c0_i32 = arith.constant 0 : i32
    %c0_i32_0 = arith.constant 0 : i32
    %c0_i32_1 = arith.constant 0 : i32
    %c0_i32_2 = arith.constant 0 : i32
    return %arg0, %c0_i32, %c0_i32_0, %c0_i32_1 : i32, i32, i32, i32
  }
  func.func @transform_2(%arg0: i32) -> (i32, i32, i32, i32) {
    %c0_i32 = arith.constant 0 : i32
    %c0_i32_0 = arith.constant 0 : i32
    %c0_i32_1 = arith.constant 0 : i32
    %c0_i32_2 = arith.constant 0 : i32
    return %arg0, %c0_i32, %c0_i32_0, %c0_i32_1 : i32, i32, i32, i32
  }
  func.func @transform_3(%arg0: i32) -> (i32, i32, i32, i32) {
    %c0_i32 = arith.constant 0 : i32
    %c0_i32_0 = arith.constant 0 : i32
    %c0_i32_1 = arith.constant 0 : i32
    %c0_i32_2 = arith.constant 0 : i32
    return %arg0, %c0_i32, %c0_i32_0, %c0_i32_1 : i32, i32, i32, i32
  }
}

module attributes {stable_mosaic.version = 11 : i64} {
  func.func @_mm_res_ln_nk1_kernel(%arg0: i32, %arg1: memref<16x128xbf16, #tpu.memory_space<vmem>>, %arg2: memref<128x128xbf16, #tpu.memory_space<vmem>>, %arg3: memref<1x128xf32, #tpu.memory_space<vmem>>, %arg4: memref<16x128xbf16, #tpu.memory_space<vmem>>, %arg5: memref<1x128xf32, #tpu.memory_space<vmem>>, %arg6: memref<1x128xf32, #tpu.memory_space<vmem>>, %arg7: memref<16x128xbf16, #tpu.memory_space<vmem>>) attributes {dimension_semantics = [#tpu.dimension_semantics<parallel>], iteration_bounds = array<i64: 2>, scalar_prefetch = 0 : i64, scratch_operands = 0 : i64, tpu.core_type = #tpu.core_type<tc>, window_params = [{transform_indices = @transform_0, window_bounds = array<i64: 16, 128>}, {pipeline_mode = #tpu.pipeline_mode<synchronous>, transform_indices = @transform_1, window_bounds = array<i64: 128, 128>}, {pipeline_mode = #tpu.pipeline_mode<synchronous>, transform_indices = @transform_2, window_bounds = array<i64: 1, 128>}, {transform_indices = @transform_3, window_bounds = array<i64: 16, 128>}, {pipeline_mode = #tpu.pipeline_mode<synchronous>, transform_indices = @transform_4, window_bounds = array<i64: 1, 128>}, {pipeline_mode = #tpu.pipeline_mode<synchronous>, transform_indices = @transform_5, window_bounds = array<i64: 1, 128>}, {transform_indices = @transform_6, window_bounds = array<i64: 16, 128>}]} {
    %c0 = arith.constant 0 : index
    %c0_0 = arith.constant 0 : index
    %0 = vector.load %arg1[%c0, %c0_0] : memref<16x128xbf16, #tpu.memory_space<vmem>>, vector<16x128xbf16>
    %c0_1 = arith.constant 0 : index
    %c0_2 = arith.constant 0 : index
    %1 = vector.load %arg2[%c0_1, %c0_2] : memref<128x128xbf16, #tpu.memory_space<vmem>>, vector<128x128xbf16>
    %cst = arith.constant dense<0.000000e+00> : vector<16x128xf32>
    %2 = tpu.matmul %0, %1, %cst {dimension_numbers = #tpu.dot_dimension_numbers<[1], [0], [0], [1], [0, 0, 1, 1], [], []>} : vector<16x128xbf16>, vector<128x128xbf16>, vector<16x128xf32> -> vector<16x128xf32>
    %c0_3 = arith.constant 0 : index
    %c0_4 = arith.constant 0 : index
    %3 = vector.load %arg3[%c0_3, %c0_4] : memref<1x128xf32, #tpu.memory_space<vmem>>, vector<1x128xf32>
    %4 = vector.broadcast %3 : vector<1x128xf32> to vector<16x128xf32>
    %5 = arith.addf %2, %4 : vector<16x128xf32>
    %c0_5 = arith.constant 0 : index
    %c0_6 = arith.constant 0 : index
    %6 = vector.load %arg4[%c0_5, %c0_6] : memref<16x128xbf16, #tpu.memory_space<vmem>>, vector<16x128xbf16>
    %7 = arith.extf %6 : vector<16x128xbf16> to vector<16x128xf32>
    %8 = arith.addf %5, %7 : vector<16x128xf32>
    %c0_7 = arith.constant 0 : index
    %c0_8 = arith.constant 0 : index
    %9 = vector.load %arg5[%c0_7, %c0_8] : memref<1x128xf32, #tpu.memory_space<vmem>>, vector<1x128xf32>
    %c0_9 = arith.constant 0 : index
    %c0_10 = arith.constant 0 : index
    %10 = vector.load %arg6[%c0_9, %c0_10] : memref<1x128xf32, #tpu.memory_space<vmem>>, vector<1x128xf32>
    %cst_11 = arith.constant dense<0.000000e+00> : vector<16xf32>
    %11 = vector.multi_reduction <add>, %8, %cst_11 [1] : vector<16x128xf32> to vector<16xf32>
    %12 = vector.shape_cast %11 : vector<16xf32> to vector<16x1xf32>
    %cst_12 = arith.constant 1.280000e+02 : f32
    %13 = vector.broadcast %cst_12 : f32 to vector<16x1xf32>
    %14 = arith.divf %12, %13 : vector<16x1xf32>
    %15 = vector.broadcast %14 : vector<16x1xf32> to vector<16x128xf32>
    %16 = arith.subf %8, %15 : vector<16x128xf32>
    %17 = arith.mulf %16, %16 : vector<16x128xf32>
    %cst_13 = arith.constant dense<0.000000e+00> : vector<16xf32>
    %18 = vector.multi_reduction <add>, %17, %cst_13 [1] : vector<16x128xf32> to vector<16xf32>
    %19 = vector.shape_cast %18 : vector<16xf32> to vector<16x1xf32>
    %cst_14 = arith.constant 1.280000e+02 : f32
    %20 = vector.broadcast %cst_14 : f32 to vector<16x1xf32>
    %21 = arith.divf %19, %20 : vector<16x1xf32>
    %cst_15 = arith.constant 9.99999974E-6 : f32
    %22 = vector.broadcast %cst_15 : f32 to vector<16x1xf32>
    %23 = arith.addf %21, %22 : vector<16x1xf32>
    %24 = math.rsqrt %23 : vector<16x1xf32>
    %25 = vector.broadcast %24 : vector<16x1xf32> to vector<16x128xf32>
    %26 = arith.mulf %16, %25 : vector<16x128xf32>
    %27 = vector.broadcast %9 : vector<1x128xf32> to vector<16x128xf32>
    %28 = arith.mulf %26, %27 : vector<16x128xf32>
    %29 = vector.broadcast %10 : vector<1x128xf32> to vector<16x128xf32>
    %30 = arith.addf %28, %29 : vector<16x128xf32>
    %31 = arith.truncf %30 : vector<16x128xf32> to vector<16x128xbf16>
    %c0_16 = arith.constant 0 : index
    %c0_17 = arith.constant 0 : index
    %32 = vector.load %arg7[%c0_16, %c0_17] : memref<16x128xbf16, #tpu.memory_space<vmem>>, vector<16x128xbf16>
    tpu.vector_store %arg7[%c0_16, %c0_17], %31 {strides = array<i32>} : memref<16x128xbf16, #tpu.memory_space<vmem>>, vector<16x128xbf16>,
    return
  }
  func.func @transform_0(%arg0: i32) -> (i32, i32) {
    %c0_i32 = arith.constant 0 : i32
    %c0_i32_0 = arith.constant 0 : i32
    return %arg0, %c0_i32 : i32, i32
  }
  func.func @transform_1(%arg0: i32) -> (i32, i32) {
    %c0_i32 = arith.constant 0 : i32
    %c0_i32_0 = arith.constant 0 : i32
    %c0_i32_1 = arith.constant 0 : i32
    return %c0_i32, %c0_i32_0 : i32, i32
  }
  func.func @transform_2(%arg0: i32) -> (i32, i32) {
    %c0_i32 = arith.constant 0 : i32
    %c0_i32_0 = arith.constant 0 : i32
    %c0_i32_1 = arith.constant 0 : i32
    return %c0_i32, %c0_i32_0 : i32, i32
  }
  func.func @transform_3(%arg0: i32) -> (i32, i32) {
    %c0_i32 = arith.constant 0 : i32
    %c0_i32_0 = arith.constant 0 : i32
    return %arg0, %c0_i32 : i32, i32
  }
  func.func @transform_4(%arg0: i32) -> (i32, i32) {
    %c0_i32 = arith.constant 0 : i32
    %c0_i32_0 = arith.constant 0 : i32
    %c0_i32_1 = arith.constant 0 : i32
    return %c0_i32, %c0_i32_0 : i32, i32
  }
  func.func @transform_5(%arg0: i32) -> (i32, i32) {
    %c0_i32 = arith.constant 0 : i32
    %c0_i32_0 = arith.constant 0 : i32
    %c0_i32_1 = arith.constant 0 : i32
    return %c0_i32, %c0_i32_0 : i32, i32
  }
  func.func @transform_6(%arg0: i32) -> (i32, i32) {
    %c0_i32 = arith.constant 0 : i32
    %c0_i32_0 = arith.constant 0 : i32
    return %arg0, %c0_i32 : i32, i32
  }
}

module attributes {stable_mosaic.version = 11 : i64} {
  func.func @_mlp_fused_kernel(%arg0: i32, %arg1: memref<16x128xbf16, #tpu.memory_space<vmem>>, %arg2: memref<128x256xbf16, #tpu.memory_space<vmem>>, %arg3: memref<1x256xf32, #tpu.memory_space<vmem>>, %arg4: memref<256x128xbf16, #tpu.memory_space<vmem>>, %arg5: memref<1x128xf32, #tpu.memory_space<vmem>>, %arg6: memref<16x128xbf16, #tpu.memory_space<vmem>>, %arg7: memref<1x128xf32, #tpu.memory_space<vmem>>, %arg8: memref<1x128xf32, #tpu.memory_space<vmem>>, %arg9: memref<16x128xbf16, #tpu.memory_space<vmem>>) attributes {dimension_semantics = [#tpu.dimension_semantics<parallel>], iteration_bounds = array<i64: 2>, scalar_prefetch = 0 : i64, scratch_operands = 0 : i64, tpu.core_type = #tpu.core_type<tc>, window_params = [{transform_indices = @transform_0, window_bounds = array<i64: 16, 128>}, {pipeline_mode = #tpu.pipeline_mode<synchronous>, transform_indices = @transform_1, window_bounds = array<i64: 128, 256>}, {pipeline_mode = #tpu.pipeline_mode<synchronous>, transform_indices = @transform_2, window_bounds = array<i64: 1, 256>}, {pipeline_mode = #tpu.pipeline_mode<synchronous>, transform_indices = @transform_3, window_bounds = array<i64: 256, 128>}, {pipeline_mode = #tpu.pipeline_mode<synchronous>, transform_indices = @transform_4, window_bounds = array<i64: 1, 128>}, {transform_indices = @transform_5, window_bounds = array<i64: 16, 128>}, {pipeline_mode = #tpu.pipeline_mode<synchronous>, transform_indices = @transform_6, window_bounds = array<i64: 1, 128>}, {pipeline_mode = #tpu.pipeline_mode<synchronous>, transform_indices = @transform_7, window_bounds = array<i64: 1, 128>}, {transform_indices = @transform_8, window_bounds = array<i64: 16, 128>}]} {
    %c0 = arith.constant 0 : index
    %c0_0 = arith.constant 0 : index
    %0 = vector.load %arg1[%c0, %c0_0] : memref<16x128xbf16, #tpu.memory_space<vmem>>, vector<16x128xbf16>
    %c0_1 = arith.constant 0 : index
    %c0_2 = arith.constant 0 : index
    %1 = vector.load %arg2[%c0_1, %c0_2] : memref<128x256xbf16, #tpu.memory_space<vmem>>, vector<128x256xbf16>
    %cst = arith.constant dense<0.000000e+00> : vector<16x256xf32>
    %2 = tpu.matmul %0, %1, %cst {dimension_numbers = #tpu.dot_dimension_numbers<[1], [0], [0], [1], [0, 0, 1, 1], [], []>} : vector<16x128xbf16>, vector<128x256xbf16>, vector<16x256xf32> -> vector<16x256xf32>
    %c0_3 = arith.constant 0 : index
    %c0_4 = arith.constant 0 : index
    %3 = vector.load %arg3[%c0_3, %c0_4] : memref<1x256xf32, #tpu.memory_space<vmem>>, vector<1x256xf32>
    %4 = vector.broadcast %3 : vector<1x256xf32> to vector<16x256xf32>
    %5 = arith.addf %2, %4 : vector<16x256xf32>
    %cst_5 = arith.constant 0.000000e+00 : f32
    %6 = vector.broadcast %cst_5 : f32 to vector<16x256xf32>
    %7 = arith.maximumf %5, %6 : vector<16x256xf32>
    %8 = arith.truncf %7 : vector<16x256xf32> to vector<16x256xbf16>
    %c0_6 = arith.constant 0 : index
    %c0_7 = arith.constant 0 : index
    %9 = vector.load %arg4[%c0_6, %c0_7] : memref<256x128xbf16, #tpu.memory_space<vmem>>, vector<256x128xbf16>
    %cst_8 = arith.constant dense<0.000000e+00> : vector<16x128xf32>
    %10 = tpu.matmul %8, %9, %cst_8 {dimension_numbers = #tpu.dot_dimension_numbers<[1], [0], [0], [1], [0, 0, 1, 1], [], []>} : vector<16x256xbf16>, vector<256x128xbf16>, vector<16x128xf32> -> vector<16x128xf32>
    %c0_9 = arith.constant 0 : index
    %c0_10 = arith.constant 0 : index
    %11 = vector.load %arg5[%c0_9, %c0_10] : memref<1x128xf32, #tpu.memory_space<vmem>>, vector<1x128xf32>
    %12 = vector.broadcast %11 : vector<1x128xf32> to vector<16x128xf32>
    %13 = arith.addf %10, %12 : vector<16x128xf32>
    %c0_11 = arith.constant 0 : index
    %c0_12 = arith.constant 0 : index
    %14 = vector.load %arg6[%c0_11, %c0_12] : memref<16x128xbf16, #tpu.memory_space<vmem>>, vector<16x128xbf16>
    %15 = arith.extf %14 : vector<16x128xbf16> to vector<16x128xf32>
    %16 = arith.addf %13, %15 : vector<16x128xf32>
    %c0_13 = arith.constant 0 : index
    %c0_14 = arith.constant 0 : index
    %17 = vector.load %arg7[%c0_13, %c0_14] : memref<1x128xf32, #tpu.memory_space<vmem>>, vector<1x128xf32>
    %c0_15 = arith.constant 0 : index
    %c0_16 = arith.constant 0 : index
    %18 = vector.load %arg8[%c0_15, %c0_16] : memref<1x128xf32, #tpu.memory_space<vmem>>, vector<1x128xf32>
    %cst_17 = arith.constant dense<0.000000e+00> : vector<16xf32>
    %19 = vector.multi_reduction <add>, %16, %cst_17 [1] : vector<16x128xf32> to vector<16xf32>
    %20 = vector.shape_cast %19 : vector<16xf32> to vector<16x1xf32>
    %cst_18 = arith.constant 1.280000e+02 : f32
    %21 = vector.broadcast %cst_18 : f32 to vector<16x1xf32>
    %22 = arith.divf %20, %21 : vector<16x1xf32>
    %23 = vector.broadcast %22 : vector<16x1xf32> to vector<16x128xf32>
    %24 = arith.subf %16, %23 : vector<16x128xf32>
    %25 = arith.mulf %24, %24 : vector<16x128xf32>
    %cst_19 = arith.constant dense<0.000000e+00> : vector<16xf32>
    %26 = vector.multi_reduction <add>, %25, %cst_19 [1] : vector<16x128xf32> to vector<16xf32>
    %27 = vector.shape_cast %26 : vector<16xf32> to vector<16x1xf32>
    %cst_20 = arith.constant 1.280000e+02 : f32
    %28 = vector.broadcast %cst_20 : f32 to vector<16x1xf32>
    %29 = arith.divf %27, %28 : vector<16x1xf32>
    %cst_21 = arith.constant 9.99999974E-6 : f32
    %30 = vector.broadcast %cst_21 : f32 to vector<16x1xf32>
    %31 = arith.addf %29, %30 : vector<16x1xf32>
    %32 = math.rsqrt %31 : vector<16x1xf32>
    %33 = vector.broadcast %32 : vector<16x1xf32> to vector<16x128xf32>
    %34 = arith.mulf %24, %33 : vector<16x128xf32>
    %35 = vector.broadcast %17 : vector<1x128xf32> to vector<16x128xf32>
    %36 = arith.mulf %34, %35 : vector<16x128xf32>
    %37 = vector.broadcast %18 : vector<1x128xf32> to vector<16x128xf32>
    %38 = arith.addf %36, %37 : vector<16x128xf32>
    %39 = arith.truncf %38 : vector<16x128xf32> to vector<16x128xbf16>
    %c0_22 = arith.constant 0 : index
    %c0_23 = arith.constant 0 : index
    %40 = vector.load %arg9[%c0_22, %c0_23] : memref<16x128xbf16, #tpu.memory_space<vmem>>, vector<16x128xbf16>
    tpu.vector_store %arg9[%c0_22, %c0_23], %39 {strides = array<i32>} : memref<16x128xbf16, #tpu.memory_space<vmem>>, vector<16x128xbf16>,
    return
  }
  func.func @transform_0(%arg0: i32) -> (i32, i32) {
    %c0_i32 = arith.constant 0 : i32
    %c0_i32_0 = arith.constant 0 : i32
    return %arg0, %c0_i32 : i32, i32
  }
  func.func @transform_1(%arg0: i32) -> (i32, i32) {
    %c0_i32 = arith.constant 0 : i32
    %c0_i32_0 = arith.constant 0 : i32
    %c0_i32_1 = arith.constant 0 : i32
    return %c0_i32, %c0_i32_0 : i32, i32
  }
  func.func @transform_2(%arg0: i32) -> (i32, i32) {
    %c0_i32 = arith.constant 0 : i32
    %c0_i32_0 = arith.constant 0 : i32
    %c0_i32_1 = arith.constant 0 : i32
    return %c0_i32, %c0_i32_0 : i32, i32
  }
  func.func @transform_3(%arg0: i32) -> (i32, i32) {
    %c0_i32 = arith.constant 0 : i32
    %c0_i32_0 = arith.constant 0 : i32
    %c0_i32_1 = arith.constant 0 : i32
    return %c0_i32, %c0_i32_0 : i32, i32
  }
  func.func @transform_4(%arg0: i32) -> (i32, i32) {
    %c0_i32 = arith.constant 0 : i32
    %c0_i32_0 = arith.constant 0 : i32
    %c0_i32_1 = arith.constant 0 : i32
    return %c0_i32, %c0_i32_0 : i32, i32
  }
  func.func @transform_5(%arg0: i32) -> (i32, i32) {
    %c0_i32 = arith.constant 0 : i32
    %c0_i32_0 = arith.constant 0 : i32
    return %arg0, %c0_i32 : i32, i32
  }
  func.func @transform_6(%arg0: i32) -> (i32, i32) {
    %c0_i32 = arith.constant 0 : i32
    %c0_i32_0 = arith.constant 0 : i32
    %c0_i32_1 = arith.constant 0 : i32
    return %c0_i32, %c0_i32_0 : i32, i32
  }
  func.func @transform_7(%arg0: i32) -> (i32, i32) {
    %c0_i32 = arith.constant 0 : i32
    %c0_i32_0 = arith.constant 0 : i32
    %c0_i32_1 = arith.constant 0 : i32
    return %c0_i32, %c0_i32_0 : i32, i32
  }
  func.func @transform_8(%arg0: i32) -> (i32, i32) {
    %c0_i32 = arith.constant 0 : i32
    %c0_i32_0 = arith.constant 0 : i32
    return %arg0, %c0_i32 : i32, i32
  }
}

module attributes {stable_mosaic.version = 11 : i64} {
  func.func @_mm_nk1_kernel(%arg0: i32, %arg1: i32, %arg2: memref<32x128xbf16, #tpu.memory_space<vmem>>, %arg3: memref<128x128xbf16, #tpu.memory_space<vmem>>, %arg4: memref<32x128xf32, #tpu.memory_space<vmem>>) attributes {dimension_semantics = [#tpu.dimension_semantics<parallel>, #tpu.dimension_semantics<parallel>], iteration_bounds = array<i64: 1, 2>, scalar_prefetch = 0 : i64, scratch_operands = 0 : i64, tpu.core_type = #tpu.core_type<tc>, window_params = [{transform_indices = @transform_0, window_bounds = array<i64: 32, 128>}, {transform_indices = @transform_1, window_bounds = array<i64: 128, 128>}, {transform_indices = @transform_2, window_bounds = array<i64: 32, 128>}]} {
    %c0 = arith.constant 0 : index
    %c0_0 = arith.constant 0 : index
    %0 = vector.load %arg2[%c0, %c0_0] : memref<32x128xbf16, #tpu.memory_space<vmem>>, vector<32x128xbf16>
    %c0_1 = arith.constant 0 : index
    %c0_2 = arith.constant 0 : index
    %1 = vector.load %arg3[%c0_1, %c0_2] : memref<128x128xbf16, #tpu.memory_space<vmem>>, vector<128x128xbf16>
    %cst = arith.constant dense<0.000000e+00> : vector<32x128xf32>
    %2 = tpu.matmul %0, %1, %cst {dimension_numbers = #tpu.dot_dimension_numbers<[1], [0], [0], [1], [0, 0, 1, 1], [], []>} : vector<32x128xbf16>, vector<128x128xbf16>, vector<32x128xf32> -> vector<32x128xf32>
    %c0_3 = arith.constant 0 : index
    %c0_4 = arith.constant 0 : index
    %3 = vector.load %arg4[%c0_3, %c0_4] : memref<32x128xf32, #tpu.memory_space<vmem>>, vector<32x128xf32>
    tpu.vector_store %arg4[%c0_3, %c0_4], %2 {strides = array<i32>} : memref<32x128xf32, #tpu.memory_space<vmem>>, vector<32x128xf32>,
    return
  }
  func.func @transform_0(%arg0: i32, %arg1: i32) -> (i32, i32) {
    %c0_i32 = arith.constant 0 : i32
    %c0_i32_0 = arith.constant 0 : i32
    return %arg0, %c0_i32 : i32, i32
  }
  func.func @transform_1(%arg0: i32, %arg1: i32) -> (i32, i32) {
    %c0_i32 = arith.constant 0 : i32
    %c0_i32_0 = arith.constant 0 : i32
    return %c0_i32, %arg1 : i32, i32
  }
  func.func @transform_2(%arg0: i32, %arg1: i32) -> (i32, i32) {
    %c0_i32 = arith.constant 0 : i32
    return %arg0, %arg1 : i32, i32
  }
}

module attributes {stable_mosaic.version = 11 : i64} {
  func.func @_layernorm_kernel(%arg0: i32, %arg1: memref<16x128xbf16, #tpu.memory_space<vmem>>, %arg2: memref<1x128xf32, #tpu.memory_space<vmem>>, %arg3: memref<1x128xf32, #tpu.memory_space<vmem>>, %arg4: memref<16x128xbf16, #tpu.memory_space<vmem>>) attributes {dimension_semantics = [#tpu.dimension_semantics<parallel>], iteration_bounds = array<i64: 2>, scalar_prefetch = 0 : i64, scratch_operands = 0 : i64, tpu.core_type = #tpu.core_type<tc>, window_params = [{transform_indices = @transform_0, window_bounds = array<i64: 16, 128>}, {pipeline_mode = #tpu.pipeline_mode<synchronous>, transform_indices = @transform_1, window_bounds = array<i64: 1, 128>}, {pipeline_mode = #tpu.pipeline_mode<synchronous>, transform_indices = @transform_2, window_bounds = array<i64: 1, 128>}, {transform_indices = @transform_3, window_bounds = array<i64: 16, 128>}]} {
    %c0 = arith.constant 0 : index
    %c0_0 = arith.constant 0 : index
    %0 = vector.load %arg1[%c0, %c0_0] : memref<16x128xbf16, #tpu.memory_space<vmem>>, vector<16x128xbf16>
    %1 = arith.extf %0 : vector<16x128xbf16> to vector<16x128xf32>
    %c0_1 = arith.constant 0 : index
    %c0_2 = arith.constant 0 : index
    %2 = vector.load %arg2[%c0_1, %c0_2] : memref<1x128xf32, #tpu.memory_space<vmem>>, vector<1x128xf32>
    %c0_3 = arith.constant 0 : index
    %c0_4 = arith.constant 0 : index
    %3 = vector.load %arg3[%c0_3, %c0_4] : memref<1x128xf32, #tpu.memory_space<vmem>>, vector<1x128xf32>
    %cst = arith.constant dense<0.000000e+00> : vector<16xf32>
    %4 = vector.multi_reduction <add>, %1, %cst [1] : vector<16x128xf32> to vector<16xf32>
    %5 = vector.shape_cast %4 : vector<16xf32> to vector<16x1xf32>
    %cst_5 = arith.constant 1.280000e+02 : f32
    %6 = vector.broadcast %cst_5 : f32 to vector<16x1xf32>
    %7 = arith.divf %5, %6 : vector<16x1xf32>
    %8 = vector.broadcast %7 : vector<16x1xf32> to vector<16x128xf32>
    %9 = arith.subf %1, %8 : vector<16x128xf32>
    %10 = arith.mulf %9, %9 : vector<16x128xf32>
    %cst_6 = arith.constant dense<0.000000e+00> : vector<16xf32>
    %11 = vector.multi_reduction <add>, %10, %cst_6 [1] : vector<16x128xf32> to vector<16xf32>
    %12 = vector.shape_cast %11 : vector<16xf32> to vector<16x1xf32>
    %cst_7 = arith.constant 1.280000e+02 : f32
    %13 = vector.broadcast %cst_7 : f32 to vector<16x1xf32>
    %14 = arith.divf %12, %13 : vector<16x1xf32>
    %cst_8 = arith.constant 9.99999974E-6 : f32
    %15 = vector.broadcast %cst_8 : f32 to vector<16x1xf32>
    %16 = arith.addf %14, %15 : vector<16x1xf32>
    %17 = math.rsqrt %16 : vector<16x1xf32>
    %18 = vector.broadcast %17 : vector<16x1xf32> to vector<16x128xf32>
    %19 = arith.mulf %9, %18 : vector<16x128xf32>
    %20 = vector.broadcast %2 : vector<1x128xf32> to vector<16x128xf32>
    %21 = arith.mulf %19, %20 : vector<16x128xf32>
    %22 = vector.broadcast %3 : vector<1x128xf32> to vector<16x128xf32>
    %23 = arith.addf %21, %22 : vector<16x128xf32>
    %24 = arith.truncf %23 : vector<16x128xf32> to vector<16x128xbf16>
    %c0_9 = arith.constant 0 : index
    %c0_10 = arith.constant 0 : index
    %25 = vector.load %arg4[%c0_9, %c0_10] : memref<16x128xbf16, #tpu.memory_space<vmem>>, vector<16x128xbf16>
    tpu.vector_store %arg4[%c0_9, %c0_10], %24 {strides = array<i32>} : memref<16x128xbf16, #tpu.memory_space<vmem>>, vector<16x128xbf16>,
    return
  }
  func.func @transform_0(%arg0: i32) -> (i32, i32) {
    %c0_i32 = arith.constant 0 : i32
    %c0_i32_0 = arith.constant 0 : i32
    return %arg0, %c0_i32 : i32, i32
  }
  func.func @transform_1(%arg0: i32) -> (i32, i32) {
    %c0_i32 = arith.constant 0 : i32
    %c0_i32_0 = arith.constant 0 : i32
    %c0_i32_1 = arith.constant 0 : i32
    return %c0_i32, %c0_i32_0 : i32, i32
  }
  func.func @transform_2(%arg0: i32) -> (i32, i32) {
    %c0_i32 = arith.constant 0 : i32
    %c0_i32_0 = arith.constant 0 : i32
    %c0_i32_1 = arith.constant 0 : i32
    return %c0_i32, %c0_i32_0 : i32, i32
  }
  func.func @transform_3(%arg0: i32) -> (i32, i32) {
    %c0_i32 = arith.constant 0 : i32
    %c0_i32_0 = arith.constant 0 : i32
    return %arg0, %c0_i32 : i32, i32
  }
}

</mosaic_0001>

<bundles_post_ra>
// kernel: gpt2_forward.10
= control target key start
LH: loop header
LB: loop body
LE: loop exit
PB: predicated region body
PF: predicated region fallthrough
CT: control target
= control target key end

     0   :  { %s828_s12 = smov 0   ;;  %s830_s13 = smov 0   ;;  %s943_s0 = inlined_call_operand.vmem [shape: bf16[32,128], index: 0, kind: input, shape index: {}]   ;;  %s944_s1 = inlined_call_operand.vmem [shape: bf16[128,384], index: 1, kind: input, shape index: {}]   ;;  %s945_s2 = inlined_call_operand.vmem [shape: f32[1,384], index: 2, kind: input, shape index: {}]   ;;  %s946_s3 = inlined_call_operand.vmem [shape: bf16[32,384], index: 3, kind: output, shape index: {}]  }
   0x1   :  { %s832_s14 = smov 0  }
   0x2 LB: > { %s25_s15 = sadd.s32 1, %s799_s13  ;;  %p651_p0 = scmp.ge.s32.totalorder %s803_s14, 1  ;;  %s803_s14 = sphi %s832_s14, %s13_s14   ;;  %s799_s13 = sphi %s830_s13, %s948_s13   ;;  %s795_s12 = sphi %s828_s12, %s947_s12  }
   0x3   : > { %p27_p1 = scmp.ge.s32.totalorder %s25_s15, 2  ;;  %p173_p2 = scmp.lt.s32.totalorder %s803_s14, 3 }
   0x5   : > { %s950_s15 = smov (%p27_p1, %s25_s15), 0  ;;  %p174_p3 = pnand %p651_p0, %p173_p2 }
   0x6   : > { %v748_v0 = vld [vmem:[%s944_s1 + $0x4] ss:$12 sps:$4 sm:$0xff] (!%p174_p3)   ;;  %v805_v1 = vmov (!%p174_p3), 0.0   ;;  %v750_v2 = vld [vmem:[%s944_s1 + $0x8] ss:$12 sps:$4 sm:$0xff] (!%p174_p3)   ;;  %vm806_vm0 = vmmov (!%p174_p3), 0   ;;  %v277_v27 = vlaneseq (!%p174_p3) }
   0x7   : > { %177 = sbr.rel (%p174_p3) target bundleno = 260 (0x104), region = 32  ;;  %700 = vmatprep.subr.bf16.mxu1 (!%p174_p3), %v805_v1  ;;  %716 = vmatprep.mubr.msk.bf16.mxu1 (!%p174_p3), %vm806_vm0, %v805_v1  ;;  %v751_v3 = vld [vmem:[%s944_s1] ss:$12 sps:$4 sm:$0xff] (!%p174_p3)   ;;  %s652_s22 = sshll.u32 (!%p174_p3), %s795_s12, 1  ;;  %v752_v4 = vld [vmem:[%s944_s1 + $0x1c] ss:$12 sps:$4 sm:$0xff] (!%p174_p3)  }
   0x8   : > { %426 = vmatprep.subr.bf16.mxu0 (!%p174_p3), %v748_v0  ;;  %701 = vmatpush3.bf16.msra.mxu1 (!%p174_p3), %v750_v2  ;;  %v807_v5 = vmov (!%p174_p3), 0   ;;  %v754_v6 = vld [vmem:[%s944_s1 + $0x20] ss:$12 sps:$4 sm:$0xff] (!%p174_p3)   ;;  %v755_v7 = vld [vmem:[%s944_s1 + $0x18] ss:$12 sps:$4 sm:$0xff] (!%p174_p3)   ;;  %p212_p4 = scmp.lt.s32.totalorder (!%p174_p3), %s652_s22, 3 }
   0x9   : > { %458 = vmatprep.mubr.bf16.mxu0 (!%p174_p3), %v807_v5  ;;  %427 = vmatpush1.bf16.msra.mxu0 (!%p174_p3), %v751_v3  ;;  %v756_v8 = vld [vmem:[%s944_s1 + $0x34] ss:$12 sps:$4 sm:$0xff] (!%p174_p3)   ;;  %v758_v9 = vld [vmem:[%s944_s1 + $0x38] ss:$12 sps:$4 sm:$0xff] (!%p174_p3)   ;;  %v759_v10 = vld [vmem:[%s944_s1 + $0x30] ss:$12 sps:$4 sm:$0xff] (!%p174_p3)  }
   0xa   : > { %702 = vmatprep.subr.bf16.mxu1 (!%p174_p3), %v805_v1  ;;  %428 = vmatprep.subr.bf16.mxu0 (!%p174_p3), %v752_v4  ;;  %v760_v11 = vld [vmem:[%s944_s1 + $0x4c] ss:$12 sps:$4 sm:$0xff] (!%p174_p3)   ;;  %v762_v12 = vld [vmem:[%s944_s1 + $0x50] ss:$12 sps:$4 sm:$0xff] (!%p174_p3)   ;;  %v763_v13 = vld [vmem:[%s944_s1 + $0x48] ss:$12 sps:$4 sm:$0xff] (!%p174_p3)  }
   0xb   : > { %v764_v14 = vld [vmem:[%s944_s1 + $0x64] ss:$12 sps:$4 sm:$0xff] (!%p174_p3)   ;;  %v766_v15 = vld [vmem:[%s944_s1 + $0x68] ss:$12 sps:$4 sm:$0xff] (!%p174_p3)   ;;  %v767_v16 = vld [vmem:[%s944_s1 + $0x60] ss:$12 sps:$4 sm:$0xff] (!%p174_p3)  }
   0xc   : > { %703 = vmatpush3.bf16.msra.mxu1 (!%p174_p3), %v754_v6  ;;  %v768_v17 = vld [vmem:[%s944_s1 + $0x7c] ss:$12 sps:$4 sm:$0xff] (!%p174_p3)   ;;  %v770_v18 = vld [vmem:[%s944_s1 + $0x80] ss:$12 sps:$4 sm:$0xff] (!%p174_p3)   ;;  %v771_v19 = vld [vmem:[%s944_s1 + $0x78] ss:$12 sps:$4 sm:$0xff] (!%p174_p3)  }
   0xd   : > { %429 = vmatpush1.bf16.msra.mxu0 (!%p174_p3), %v755_v7  ;;  %704 = vmatprep.subr.bf16.mxu1 (!%p174_p3), %v805_v1  ;;  %v772_v20 = vld [vmem:[%s944_s1 + $0x94] ss:$12 sps:$4 sm:$0xff] (!%p174_p3)   ;;  %v774_v21 = vld [vmem:[%s944_s1 + $0x98] ss:$12 sps:$4 sm:$0xff] (!%p174_p3)   ;;  %v775_v22 = vld [vmem:[%s944_s1 + $0x90] ss:$12 sps:$4 sm:$0xff] (!%p174_p3)  }
   0xe   : > { %430 = vmatprep.subr.bf16.mxu0 %v756_v8  ;;  %s952_s22 = smov (!%p212_p4, %s652_s22), 3  ;;  %v776_v23 = vld [vmem:[%s944_s1 + $0xac] ss:$12 sps:$4 sm:$0xff]   ;;  %v778_v24 = vld [vmem:[%s944_s1 + $0xb0] ss:$12 sps:$4 sm:$0xff]   ;;  %v278_v28 = vshrl.u32 %v277_v27, 7 }
   0xf   : > { %s653_s19 = sshll.u32 %s952_s22, 2  ;;  %v779_v25 = vld [vmem:[%s944_s1 + $0xa8] ss:$12 sps:$4 sm:$0xff]   ;;  %v275_v30 = vld [vmem:[%s945_s2] sm:$0x7]  ;;  %s720_s25 = smul.u32 12, %s952_s22 }
  0x10   : > { %705 = vmatpush3.bf16.msra.mxu1 %v758_v9  ;;  %s215_s29 = scalar_lea.vmem %s943_s0, %s653_s19  ;;  %v287_v29 = vsub.s32 2, %v278_v28  ;;  %v279_v31 = vsub.s32 0, %v278_v28  ;;  %v283_v32 = vsub.s32 1, %v278_v28 }
  0x11   : > { %431 = vmatpush1.bf16.msra.mxu0 %v759_v10  ;;  %706 = vmatprep.subr.bf16.mxu1 %v805_v1  ;;  %v780_v26 = vld [vmem:[%s215_s29] sm:$0xff]   ;;  %s237_s28 = scalar_lea.vmem %s946_s3, %s720_s25 }
  0x12   : > { %432 = vmatprep.subr.bf16.mxu0 %v760_v11  ;;  %v288_v33 = vrot.slane %v275_v30, %v287_v29  ;;  %v280_v34 = vrot.slane %v275_v30, %v279_v31  ;;  %v284_v35 = vrot.slane %v275_v30, %v283_v32 }
  0x14   : > { %707 = vmatpush3.bf16.msra.mxu1 %v762_v12 }
  0x15   : > { %433 = vmatpush1.bf16.msra.mxu0 %v763_v13  ;;  %708 = vmatprep.subr.bf16.mxu1 %v805_v1 }
  0x16   : > { %434 = vmatprep.subr.bf16.mxu0 %v764_v14 }
  0x18   : > { %709 = vmatpush3.bf16.msra.mxu1 %v766_v15 }
  0x19   : > { %435 = vmatpush1.bf16.msra.mxu0 %v767_v16  ;;  %710 = vmatprep.subr.bf16.mxu1 %v805_v1 }
  0x1a   : > { %436 = vmatprep.subr.bf16.mxu0 %v768_v17 }
  0x1c   : > { %711 = vmatpush3.bf16.msra.mxu1 %v770_v18 }
  0x1d   : > { %437 = vmatpush1.bf16.msra.mxu0 %v771_v19  ;;  %712 = vmatprep.subr.bf16.mxu1 %v805_v1 }
  0x1e   : > { %438 = vmatprep.subr.bf16.mxu0 %v772_v20 }
  0x20   : > { %713 = vmatpush3.bf16.msra.mxu1 %v774_v21 }
  0x21   : > { %439 = vmatpush1.bf16.msra.mxu0 %v775_v22  ;;  %714 = vmatprep.subr.bf16.mxu1 %v805_v1 }
  0x22   : > { %440 = vmatprep.subr.bf16.mxu0 %v776_v23 }
  0x24   : > { %715 = vmatpush3.bf16.msra.mxu1 %v778_v24 }
  0x25   : > { %441 = vmatpush1.bf16.msra.mxu0 %v779_v25 }
  0x27   : > { %717 = vmatmul.mubr.bf16.vlgmr.msra.gmra.mrb[0].mxu1 %v780_v26 }
  0x28   : > { %459 = vmatmul.mubr.bf16.vlgmr.msra.gmra.mrb[0].mxu0 %v780_v26 }
  0xfa   : > { %v503_v36 = vpop.f32.mrb[0].mxu1 }
  0xfb   : > { %v504_v37 = vadd.f32 %v503_v36, %v288_v33  ;;  %v460_v38 = vpop.f32.mrb[0].mxu0  ;;  %v718_v39 = vpop.f32.mrb[1].mxu1 }
  0xfc   : > { %v461_v40 = vadd.f32 %v460_v38, %v280_v34  ;;  %v462_v41 = vpop.f32.mrb[1].mxu0  ;;  %v506_v42 = vpop.f32.mrb[2].mxu1 }
  0xfd   : > { %v688_v43 = vpack.c.bf16 %v504_v37, %v504_v37  ;;  %v463_v44 = vadd.f32 %v462_v41, %v284_v35  ;;  %v507_v45 = vadd.f32 %v506_v42, %v288_v33  ;;  %v464_v46 = vpop.f32.mrb[2].mxu0  ;;  %v719_v47 = vpop.f32.mrb[3].mxu1 }
  0xfe   : > { %v465_v48 = vadd.f32 %v464_v46, %v280_v34  ;;  %v466_v49 = vpop.f32.mrb[3].mxu0 }
  0xff   : > { %531 = vst [vmem:[%s237_s28 + $0x8] sm:$0xf] %v688_v43  ;;  %v687_v50 = vpack.c.bf16 %v463_v44, %v461_v40  ;;  %v690_v51 = vpack.c.bf16 %v507_v45, %v507_v45  ;;  %v467_v52 = vadd.f32 %v466_v49, %v284_v35 }
 0x101   : > { %530 = vst [vmem:[%s237_s28] sm:$0xff] %v687_v50  ;;  %533 = vst [vmem:[%s237_s28 + $0x14] sm:$0xf] %v690_v51  ;;  %v689_v53 = vpack.c.bf16 %v467_v52, %v465_v48 }
 0x103   : > { %532 = vst [vmem:[%s237_s28 + $0xc] sm:$0xff] %v689_v53 }
 0x104 PF: > { %s13_s14 = sadd.s32 1, %s803_s14   ;;  %s947_s12 = smov %s799_s13 }
 0x105   : > { %p10_p5 = scmp.ge.s32.totalorder %s13_s14, 4   ;;  %s948_s13 = smov %s950_s15 }
 0x107   :  { %12 = sbr.rel (!%p10_p5) target bundleno = 2 (0x2), region = 68 }

// kernel: gpt2_forward.12
= control target key start
LH: loop header
LB: loop body
LE: loop exit
PB: predicated region body
PF: predicated region fallthrough
CT: control target
= control target key end

     0   :  { %s658_s21 = smov 0   ;;  %s716_s0 = inlined_call_operand.vmem [shape: bf16[32,128], index: 0, kind: input, shape index: {}]   ;;  %s717_s1 = inlined_call_operand.vmem [shape: bf16[128,128], index: 1, kind: input, shape index: {}]   ;;  %s718_s2 = inlined_call_operand.vmem [shape: f32[1,128], index: 2, kind: input, shape index: {}]   ;;  %s719_s3 = inlined_call_operand.vmem [shape: bf16[32,128], index: 3, kind: input, shape index: {}]   ;;  %s720_s4 = inlined_call_operand.vmem [shape: f32[1,128], index: 4, kind: input, shape index: {}]   ;;  %s721_s5 = inlined_call_operand.vmem [shape: f32[1,128], index: 5, kind: input, shape index: {}]   ;;  %s722_s6 = inlined_call_operand.vmem [shape: bf16[32,128], index: 6, kind: output, shape index: {}]  }
   0x1 LB: > { %s523_s22 = sadd.s32 4294967295, %s619_s21   ;;  %p527_p0 = scmp.ge.s32.totalorder %s619_s21, 1  ;;  %s619_s21 = sphi %s658_s21, %s16_s21  }
   0x2   : > { %p224_p1 = scmp.lt.s32.totalorder %s619_s21, 3 }
   0x4   : > { %p225_p2 = pnand %p527_p0, %p224_p1 }
   0x5   : > { %v600_v0 = vld [vmem:[%s717_s1] sm:$0xff] (!%p225_p2)   ;;  %v621_v1 = vmov (!%p225_p2), 0.0   ;;  %v601_v2 = vld [vmem:[%s717_s1 + $0x8] sm:$0xff] (!%p225_p2)   ;;  %vm622_vm0 = vmmov (!%p225_p2), 0   ;;  %s528_s27 = sshll.u32 (!%p225_p2), %s523_s22, 1  ;;  %v602_v3 = vld [vmem:[%s717_s1 + $0x10] sm:$0xff] (!%p225_p2)  }
   0x6   : > { %228 = sbr.rel (%p225_p2) target bundleno = 572 (0x23c), region = 44  ;;  %570 = vmatprep.subr.bf16.mxu0 (!%p225_p2), %v621_v1  ;;  %586 = vmatprep.mubr.msk.bf16.mxu0 (!%p225_p2), %vm622_vm0, %v621_v1  ;;  %p260_p3 = scmp.lt.s32.totalorder (!%p225_p2), %s528_s27, 3  ;;  %v603_v4 = vld [vmem:[%s717_s1 + $0x18] sm:$0xff] (!%p225_p2)   ;;  %v604_v5 = vld [vmem:[%s717_s1 + $0x20] sm:$0xff] (!%p225_p2)   ;;  %v605_v6 = vld [vmem:[%s717_s1 + $0x28] sm:$0xff] (!%p225_p2)  }
   0x7   : > { %571 = vmatpush3.bf16.msra.mxu0 (!%p225_p2), %v600_v0  ;;  %v606_v7 = vld [vmem:[%s717_s1 + $0x30] sm:$0xff] (!%p225_p2)   ;;  %v607_v8 = vld [vmem:[%s717_s1 + $0x38] sm:$0xff] (!%p225_p2)   ;;  %v534_v11 = vld [vmem:[%s718_s2] ss:$0 sm:$0xff] (!%p225_p2) }
   0x8   : > { %572 = vmatprep.subr.bf16.mxu0 (!%p225_p2), %v621_v1  ;;  %v544_v38 = vld [vmem:[%s720_s4] ss:$0 sm:$0xff] (!%p225_p2) }
   0x9   : > { %v545_v42 = vld [vmem:[%s721_s5] ss:$0 sm:$0xff] (!%p225_p2) }
   0xb   : > { %573 = vmatpush3.bf16.msra.mxu0 (!%p225_p2), %v601_v2 }
   0xc   : > { %574 = vmatprep.subr.bf16.mxu0 (!%p225_p2), %v621_v1 }
   0xd   : > { %s724_s27 = smov (!%p260_p3, %s528_s27), 3 }
   0xe   : > { %s675_s30 = sshll.u32 %s724_s27, 2 }
   0xf   : > { %s263_s9 = scalar_lea.vmem %s716_s0, %s675_s30  ;;  %575 = vmatpush3.bf16.msra.mxu0 %v602_v3  ;;  %s269_s23 = scalar_lea.vmem %s719_s3, %s675_s30 }
  0x10   : > { %576 = vmatprep.subr.bf16.mxu0 %v621_v1  ;;  %v608_v9 = vld [vmem:[%s263_s9] sm:$0xff]   ;;  %s275_s9 = scalar_lea.vmem %s722_s6, %s675_s30 }
  0x11   : > { %v553_v10 = vld [vmem:[%s269_s23] sm:$0xff]  }
  0x12   : > { %v554_v12 = vunpack.c.l.bf16 %v553_v10  ;;  %v555_v20 = vunpack.c.h.bf16 %v553_v10 }
  0x13   : > { %577 = vmatpush3.bf16.msra.mxu0 %v603_v4 }
  0x14   : > { %578 = vmatprep.subr.bf16.mxu0 %v621_v1 }
  0x17   : > { %579 = vmatpush3.bf16.msra.mxu0 %v604_v5 }
  0x18   : > { %580 = vmatprep.subr.bf16.mxu0 %v621_v1 }
  0x1b   : > { %581 = vmatpush3.bf16.msra.mxu0 %v605_v6 }
  0x1c   : > { %582 = vmatprep.subr.bf16.mxu0 %v621_v1 }
  0x1f   : > { %583 = vmatpush3.bf16.msra.mxu0 %v606_v7 }
  0x20   : > { %584 = vmatprep.subr.bf16.mxu0 %v621_v1 }
  0x23   : > { %585 = vmatpush3.bf16.msra.mxu0 %v607_v8 }
  0x26   : > { %587 = vmatmul.mubr.bf16.vlgmr.msra.gmra.mrb[0].mxu0 %v608_v9 }
  0xf9   : > { %v391_v13 = vpop.f32.mrb[0].mxu0 }
  0xfa   : > { %v392_v14 = vadd.f32 %v534_v11, %v391_v13  ;;  %v588_v15 = vpop.f32.mrb[1].mxu0 }
  0xfb   : > { %v394_v16 = vpop.f32.mrb[2].mxu0 }
  0xfc   : > { %v395_v17 = vadd.f32 %v534_v11, %v394_v16  ;;  %v589_v18 = vpop.f32.mrb[3].mxu0  ;;  %v402_v19 = vadd.f32 %v554_v12, %v392_v14 }
  0xfe   : > { %406 = vadd.xlane.f32.xlu0 %v402_v19  ;;  %v403_v21 = vadd.f32 %v555_v20, %v395_v17 }
 0x102   : > { %408 = vadd.xlane.f32.xlu0 %v403_v21 }
 0x18b   : > { %v407_v22 = vpop.xlane.xlu0 %406 }
 0x18c   : > { %v411_v23 = vmul.f32 0.0078125, %v407_v22 }
 0x18e   : > { %v413_v24 = vsub.f32 %v402_v19, %v411_v23 }
 0x18f   : > { %v409_v25 = vpop.xlane.xlu0 %408 }
 0x190   : > { %v412_v26 = vmul.f32 0.0078125, %v409_v25  ;;  %v415_v27 = vmul.f32 %v413_v24, %v413_v24 }
 0x192   : > { %v414_v28 = vsub.f32 %v403_v21, %v412_v26  ;;  %417 = vadd.xlane.f32.xlu1 %v415_v27 }
 0x194   : > { %v416_v29 = vmul.f32 %v414_v28, %v414_v28 }
 0x196   : > { %419 = vadd.xlane.f32.xlu1 %v416_v29 }
 0x21f   : > { %v418_v30 = vpop.xlane.xlu1 %417 }
 0x220   : > { %v421_v31 = vmul.f32 0.0078125, %v418_v30 }
 0x222   : > { %v423_v32 = vadd.f32 1e-05, %v421_v31 }
 0x223   : > { %v420_v33 = vpop.xlane.xlu1 %419 }
 0x224   : > { %609 = vrsqrt.f32 %v423_v32  ;;  %v422_v34 = vmul.f32 0.0078125, %v420_v33 }
 0x226   : > { %v424_v35 = vadd.f32 1e-05, %v422_v34 }
 0x228   : > { %611 = vrsqrt.f32 %v424_v35 }
 0x22e   : > { %v610_v36 = vpop.eup %609 }
 0x22f   : > { %v427_v37 = vmul.f32 %v610_v36, %v413_v24 }
 0x231   : > { %v435_v40 = vmul.f32 %v544_v38, %v427_v37 }
 0x232   : > { %v612_v39 = vpop.eup %611 }
 0x233   : > { %v428_v41 = vmul.f32 %v612_v39, %v414_v28  ;;  %v443_v44 = vadd.f32 %v545_v42, %v435_v40 }
 0x235   : > { %v436_v43 = vmul.f32 %v544_v38, %v428_v41 }
 0x237   : > { %v444_v45 = vadd.f32 %v545_v42, %v436_v43 }
 0x239   : > { %v559_v46 = vpack.c.bf16 %v444_v45, %v443_v44 }
 0x23b   : > { %560 = vst [vmem:[%s275_s9] sm:$0xff] %v559_v46  }
 0x23c PF: > { %s16_s21 = sadd.s32 1, %s619_s21  }
 0x23d   : > { %p13_p4 = scmp.ge.s32.totalorder %s16_s21, 4  }
 0x23f   :  { %15 = sbr.rel (!%p13_p4) target bundleno = 1 (0x1), region = 77 }

// kernel: gpt2_forward.13
= control target key start
LH: loop header
LB: loop body
LE: loop exit
PB: predicated region body
PF: predicated region fallthrough
CT: control target
= control target key end

     0   :  { %s990_s27 = smov 0   ;;  %s1128_s0 = inlined_call_operand.vmem [shape: bf16[32,128], index: 0, kind: input, shape index: {}, may-alias: {0,5}]   ;;  %s1129_s1 = inlined_call_operand.vmem [shape: bf16[128,256], index: 1, kind: input, shape index: {}]   ;;  %s1130_s2 = inlined_call_operand.vmem [shape: f32[1,256], index: 2, kind: input, shape index: {}]   ;;  %s1131_s3 = inlined_call_operand.vmem [shape: bf16[256,128], index: 3, kind: input, shape index: {}]   ;;  %s1132_s4 = inlined_call_operand.vmem [shape: f32[1,128], index: 4, kind: input, shape index: {}]   ;;  %s1133_s5 = inlined_call_operand.vmem [shape: bf16[32,128], index: 5, kind: input, shape index: {}, may-alias: {0,5}]   ;;  %s1134_s6 = inlined_call_operand.vmem [shape: f32[1,128], index: 6, kind: input, shape index: {}]   ;;  %s1135_s7 = inlined_call_operand.vmem [shape: f32[1,128], index: 7, kind: input, shape index: {}]   ;;  %s1136_s8 = inlined_call_operand.vmem [shape: bf16[32,128], index: 8, kind: output, shape index: {}]  }
   0x1 LB: > { %s798_s28 = sadd.s32 4294967295, %s942_s27   ;;  %p802_p0 = scmp.ge.s32.totalorder %s942_s27, 1  ;;  %s942_s27 = sphi %s990_s27, %s18_s27  }
   0x2   : > { %p274_p1 = scmp.lt.s32.totalorder %s942_s27, 3 }
   0x4   : > { %p275_p2 = pnand %p802_p0, %p274_p1 }
   0x5   : > { %v891_v0 = vld [vmem:[%s1129_s1 + $0x4] ss:$8 sps:$4 sm:$0xff] (!%p275_p2)   ;;  %s803_s9 = sshll.u32 (!%p275_p2), %s798_s28, 1  ;;  %v893_v1 = vld [vmem:[%s1129_s1] ss:$8 sps:$4 sm:$0xff] (!%p275_p2)   ;;  %v944_v2 = vmov (!%p275_p2), 0   ;;  %v352_v34 = vlaneseq (!%p275_p2) }
   0x6   : > { %278 = sbr.rel (%p275_p2) target bundleno = 797 (0x31d), region = 52  ;;  %480 = vmatprep.mubr.bf16.mxu0 (!%p275_p2), %v944_v2  ;;  %p314_p3 = scmp.lt.s32.totalorder (!%p275_p2), %s803_s9, 3  ;;  %448 = vmatprep.subr.bf16.mxu0 (!%p275_p2), %v891_v0  ;;  %v894_v3 = vld [vmem:[%s1129_s1 + $0x14] ss:$8 sps:$4 sm:$0xff] (!%p275_p2)   ;;  %v896_v4 = vld [vmem:[%s1129_s1 + $0x10] ss:$8 sps:$4 sm:$0xff] (!%p275_p2)  }
   0x7   : > { %449 = vmatpush1.bf16.msra.mxu0 (!%p275_p2), %v893_v1  ;;  %v897_v5 = vld [vmem:[%s1129_s1 + $0x24] ss:$8 sps:$4 sm:$0xff] (!%p275_p2)   ;;  %v899_v6 = vld [vmem:[%s1129_s1 + $0x20] ss:$8 sps:$4 sm:$0xff] (!%p275_p2)   ;;  %v900_v7 = vld [vmem:[%s1129_s1 + $0x34] ss:$8 sps:$4 sm:$0xff] (!%p275_p2)  }
   0x8   : > { %450 = vmatprep.subr.bf16.mxu0 (!%p275_p2), %v894_v3  ;;  %v902_v8 = vld [vmem:[%s1129_s1 + $0x30] ss:$8 sps:$4 sm:$0xff] (!%p275_p2)   ;;  %v903_v9 = vld [vmem:[%s1129_s1 + $0x44] ss:$8 sps:$4 sm:$0xff] (!%p275_p2)   ;;  %v905_v11 = vld [vmem:[%s1129_s1 + $0x40] ss:$8 sps:$4 sm:$0xff] (!%p275_p2)  }
   0x9   : > { %v916_v10 = vld [vmem:[%s1131_s3 + $0x40] sm:$0xff] (!%p275_p2)   ;;  %v906_v13 = vld [vmem:[%s1129_s1 + $0x54] ss:$8 sps:$4 sm:$0xff] (!%p275_p2)   ;;  %v918_v14 = vld [vmem:[%s1131_s3 + $0x48] sm:$0xff] (!%p275_p2)   ;;  %v353_v35 = vshrl.u32 (!%p275_p2), %v352_v34, 7 }
   0xa   : > { %v917_v12 = vld [vmem:[%s1131_s3] sm:$0xff] (!%p275_p2)   ;;  %860 = vmatprep.subr.bf16.mxu1 (!%p275_p2), %v916_v10  ;;  %v919_v15 = vld [vmem:[%s1131_s3 + $0x8] sm:$0xff] (!%p275_p2)   ;;  %v920_v16 = vld [vmem:[%s1131_s3 + $0x50] sm:$0xff] (!%p275_p2)  }
   0xb   : > { %451 = vmatpush1.bf16.msra.mxu0 (!%p275_p2), %v896_v4  ;;  %861 = vmatpush3.bf16.msra.mxu1 (!%p275_p2), %v917_v12  ;;  %v908_v17 = vld [vmem:[%s1129_s1 + $0x50] ss:$8 sps:$4 sm:$0xff] (!%p275_p2)   ;;  %v909_v18 = vld [vmem:[%s1129_s1 + $0x64] ss:$8 sps:$4 sm:$0xff] (!%p275_p2)   ;;  %v911_v21 = vld [vmem:[%s1129_s1 + $0x60] ss:$8 sps:$4 sm:$0xff] (!%p275_p2)  }
   0xc   : > { %452 = vmatprep.subr.bf16.mxu0 (!%p275_p2), %v897_v5  ;;  %862 = vmatprep.subr.bf16.mxu1 (!%p275_p2), %v918_v14  ;;  %v921_v19 = vld [vmem:[%s1131_s3 + $0x10] sm:$0xff] (!%p275_p2)   ;;  %v922_v20 = vld [vmem:[%s1131_s3 + $0x58] sm:$0xff] (!%p275_p2)   ;;  %v924_v24 = vld [vmem:[%s1131_s3 + $0x60] sm:$0xff] (!%p275_p2)   ;;  %v354_v36 = vsub.s32 (!%p275_p2), 0, %v353_v35  ;;  %v358_v38 = vsub.s32 (!%p275_p2), 1, %v353_v35 }
   0xd   : > { %s1138_s9 = smov (!%p314_p3, %s803_s9), 3  ;;  %v912_v22 = vld [vmem:[%s1129_s1 + $0x74] ss:$8 sps:$4 sm:$0xff]   ;;  %v914_v25 = vld [vmem:[%s1129_s1 + $0x70] ss:$8 sps:$4 sm:$0xff]   ;;  %v925_v26 = vld [vmem:[%s1131_s3 + $0x20] sm:$0xff]  }
   0xe   : > { %s1013_s18 = sshll.u32 %s1138_s9, 2  ;;  %v923_v23 = vld [vmem:[%s1131_s3 + $0x18] sm:$0xff]   ;;  %v926_v27 = vld [vmem:[%s1131_s3 + $0x68] sm:$0xff]   ;;  %v928_v30 = vld [vmem:[%s1131_s3 + $0x70] sm:$0xff]  }
   0xf   : > { %s317_s25 = scalar_lea.vmem %s1128_s0, %s1013_s18  ;;  %453 = vmatpush1.bf16.msra.mxu0 %v899_v6  ;;  %863 = vmatpush3.bf16.msra.mxu1 %v919_v15  ;;  %v927_v29 = vld [vmem:[%s1131_s3 + $0x28] sm:$0xff]   ;;  %v929_v31 = vld [vmem:[%s1131_s3 + $0x30] sm:$0xff]   ;;  %v930_v32 = vld [vmem:[%s1131_s3 + $0x78] sm:$0xff]   ;;  %s323_s23 = scalar_lea.vmem %s1133_s5, %s1013_s18 }
  0x10   : > { %454 = vmatprep.subr.bf16.mxu0 %v900_v7  ;;  %864 = vmatprep.subr.bf16.mxu1 %v920_v16  ;;  %v915_v28 = vld [vmem:[%s317_s25] sm:$0xff]   ;;  %v931_v33 = vld [vmem:[%s1131_s3 + $0x38] sm:$0xff]   ;;  %s329_s12 = scalar_lea.vmem %s1136_s8, %s1013_s18 }
  0x11   : > { %v350_v37 = vld [vmem:[%s1130_s2] sm:$0x3] }
  0x12   : > { %v355_v39 = vrot.slane %v350_v37, %v354_v36  ;;  %v359_v40 = vrot.slane %v350_v37, %v358_v38  ;;  %v852_v55 = vld [vmem:[%s323_s23] sm:$0xff]  }
  0x13   : > { %455 = vmatpush1.bf16.msra.mxu0 %v902_v8  ;;  %865 = vmatpush3.bf16.msra.mxu1 %v921_v19  ;;  %v826_v57 = vld [vmem:[%s1132_s4] ss:$0 sm:$0xff]  ;;  %v853_v61 = vunpack.c.l.bf16 %v852_v55  ;;  %v854_v3 = vunpack.c.h.bf16 %v852_v55 }
  0x14   : > { %456 = vmatprep.subr.bf16.mxu0 %v903_v9  ;;  %866 = vmatprep.subr.bf16.mxu1 %v922_v20 }
  0x17   : > { %457 = vmatpush1.bf16.msra.mxu0 %v905_v11  ;;  %867 = vmatpush3.bf16.msra.mxu1 %v923_v23 }
  0x18   : > { %458 = vmatprep.subr.bf16.mxu0 %v906_v13  ;;  %868 = vmatprep.subr.bf16.mxu1 %v924_v24 }
  0x1b   : > { %459 = vmatpush1.bf16.msra.mxu0 %v908_v17  ;;  %869 = vmatpush3.bf16.msra.mxu1 %v925_v26 }
  0x1c   : > { %460 = vmatprep.subr.bf16.mxu0 %v909_v18  ;;  %870 = vmatprep.subr.bf16.mxu1 %v926_v27 }
  0x1f   : > { %461 = vmatpush1.bf16.msra.mxu0 %v911_v21  ;;  %871 = vmatpush3.bf16.msra.mxu1 %v927_v29  ;;  %v843_v21 = vld [vmem:[%s1134_s6] ss:$0 sm:$0xff] }
  0x20   : > { %462 = vmatprep.subr.bf16.mxu0 %v912_v22  ;;  %872 = vmatprep.subr.bf16.mxu1 %v928_v30 }
  0x23   : > { %463 = vmatpush1.bf16.msra.mxu0 %v914_v25  ;;  %873 = vmatpush3.bf16.msra.mxu1 %v929_v31  ;;  %v844_v25 = vld [vmem:[%s1135_s7] ss:$0 sm:$0xff] }
  0x24   : > { %874 = vmatprep.subr.bf16.mxu1 %v930_v32 }
  0x26   : > { %481 = vmatmul.mubr.bf16.vlgmr.msra.gmra.mrb[0].mxu0 %v915_v28 }
  0x27   : > { %875 = vmatpush3.bf16.msra.mxu1 %v931_v33 }
  0xf9   : > { %v482_v41 = vpop.f32.mrb[0].mxu0 }
  0xfa   : > { %v483_v42 = vadd.f32 %v482_v41, %v355_v39  ;;  %v484_v43 = vpop.f32.mrb[1].mxu0 }
  0xfb   : > { %v485_v44 = vadd.f32 %v484_v43, %v359_v40  ;;  %v486_v45 = vpop.f32.mrb[2].mxu0 }
  0xfc   : > { %v487_v46 = vadd.f32 %v486_v45, %v355_v39  ;;  %v488_v47 = vpop.f32.mrb[3].mxu0  ;;  %v491_v49 = vmax.f32 %v483_v42, 0.0 }
  0xfd   : > { %v489_v48 = vadd.f32 %v488_v47, %v359_v40  ;;  %v492_v51 = vmax.f32 %v485_v44, 0.0 }
  0xfe   : > { %v493_v50 = vmax.f32 %v487_v46, 0.0 }
  0xff   : > { %v494_v52 = vmax.f32 %v489_v48, 0.0 }
 0x100   : > { %v495_v53 = vpack.c.bf16 %v493_v50, %v491_v49 }
 0x101   : > { %v496_v54 = vpack.c.bf16 %v494_v52, %v492_v51 }
 0x103   : > { %664 = vmatprep.mubr.bf16.mxu1 %v496_v54 }
 0x104   : > { %665 = vmatmul.mubr.bf16.vlgmr.msra.gmra.mrb[0].mxu1 %v495_v53 }
 0x1d7   : > { %v876_v56 = vpop.f32.mrb[0].mxu1 }
 0x1d8   : > { %v877_v58 = vpop.f32.mrb[1].mxu1 }
 0x1d9   : > { %v878_v59 = vadd.f32 %v877_v58, %v876_v56  ;;  %v879_v60 = vpop.f32.mrb[2].mxu1 }
 0x1da   : > { %v880_v62 = vpop.f32.mrb[3].mxu1 }
 0x1db   : > { %v667_v63 = vadd.f32 %v878_v59, %v826_v57  ;;  %v881_v0 = vadd.f32 %v880_v62, %v879_v60 }
 0x1dd   : > { %v670_v1 = vadd.f32 %v881_v0, %v826_v57  ;;  %v677_v2 = vadd.f32 %v853_v61, %v667_v63 }
 0x1df   : > { %681 = vadd.xlane.f32.xlu0 %v677_v2  ;;  %v678_v4 = vadd.f32 %v854_v3, %v670_v1 }
 0x1e3   : > { %683 = vadd.xlane.f32.xlu0 %v678_v4 }
 0x26c   : > { %v682_v5 = vpop.xlane.xlu0 %681 }
 0x26d   : > { %v686_v6 = vmul.f32 0.0078125, %v682_v5 }
 0x26f   : > { %v688_v7 = vsub.f32 %v677_v2, %v686_v6 }
 0x270   : > { %v684_v8 = vpop.xlane.xlu0 %683 }
 0x271   : > { %v687_v9 = vmul.f32 0.0078125, %v684_v8  ;;  %v690_v10 = vmul.f32 %v688_v7, %v688_v7 }
 0x273   : > { %v689_v11 = vsub.f32 %v678_v4, %v687_v9  ;;  %692 = vadd.xlane.f32.xlu1 %v690_v10 }
 0x275   : > { %v691_v12 = vmul.f32 %v689_v11, %v689_v11 }
 0x277   : > { %694 = vadd.xlane.f32.xlu1 %v691_v12 }
 0x300   : > { %v693_v13 = vpop.xlane.xlu1 %692 }
 0x301   : > { %v696_v14 = vmul.f32 0.0078125, %v693_v13 }
 0x303   : > { %v698_v15 = vadd.f32 1e-05, %v696_v14 }
 0x304   : > { %v695_v16 = vpop.xlane.xlu1 %694 }
 0x305   : > { %932 = vrsqrt.f32 %v698_v15  ;;  %v697_v17 = vmul.f32 0.0078125, %v695_v16 }
 0x307   : > { %v699_v18 = vadd.f32 1e-05, %v697_v17 }
 0x309   : > { %934 = vrsqrt.f32 %v699_v18 }
 0x30f   : > { %v933_v19 = vpop.eup %932 }
 0x310   : > { %v702_v20 = vmul.f32 %v933_v19, %v688_v7 }
 0x312   : > { %v710_v23 = vmul.f32 %v843_v21, %v702_v20 }
 0x313   : > { %v935_v22 = vpop.eup %934 }
 0x314   : > { %v703_v24 = vmul.f32 %v935_v22, %v689_v11  ;;  %v718_v27 = vadd.f32 %v844_v25, %v710_v23 }
 0x316   : > { %v711_v26 = vmul.f32 %v843_v21, %v703_v24 }
 0x318   : > { %v719_v28 = vadd.f32 %v844_v25, %v711_v26 }
 0x31a   : > { %v858_v29 = vpack.c.bf16 %v719_v28, %v718_v27 }
 0x31c   : > { %859 = vst [vmem:[%s329_s12] sm:$0xff] %v858_v29  }
 0x31d PF: > { %s18_s27 = sadd.s32 1, %s942_s27  }
 0x31e   : > { %p15_p4 = scmp.ge.s32.totalorder %s18_s27, 4  }
 0x320   :  { %17 = sbr.rel (!%p15_p4) target bundleno = 1 (0x1), region = 85 }

// kernel: gpt2_forward.11
= control target key start
LH: loop header
LB: loop body
LE: loop exit
PB: predicated region body
PF: predicated region fallthrough
CT: control target
= control target key end

     0   :  { %s1105_s12 = smov 0   ;;  %s1218_s0 = inlined_call_operand.vmem [shape: bf16[2,4,16,32], index: 0, kind: input, shape index: {}]   ;;  %s1219_s1 = inlined_call_operand.vmem [shape: bf16[2,4,16,32], index: 1, kind: input, shape index: {}]   ;;  %s1220_s2 = inlined_call_operand.vmem [shape: bf16[2,4,16,32], index: 2, kind: input, shape index: {}]   ;;  %s1221_s3 = inlined_call_operand.vmem [shape: bf16[2,4,16,32], index: 3, kind: output, shape index: {}]  }
   0x1 LB: > { %s906_s13 = sadd.s32 4294967295, %s1081_s12   ;;  %p910_p0 = scmp.ge.s32.totalorder %s1081_s12, 1  ;;  %s1081_s12 = sphi %s1105_s12, %s13_s12  }
   0x2   : > { %p157_p1 = scmp.lt.s32.totalorder %s1081_s12, 3 }
   0x4   : > { %p158_p2 = pnand %p910_p0, %p157_p1 }
   0x5   : > { %p191_p3 = scmp.lt.s32.totalorder (!%p158_p2), %s906_s13, 1  ;;  %v1083_v0 = vmov (!%p158_p2), 0.0   ;;  %vm1084_vm0 = vmmov (!%p158_p2), 0   ;;  %vm255_vm1 = vcmask (!%p158_p2), 261120   ;;  %v474_v29 = vlaneseq (!%p158_p2) }
   0x6   : > { %161 = sbr.rel (%p158_p2) target bundleno = 787 (0x313), region = 32  ;;  %977 = vmatprep.subr.bf16.mxu0 (!%p158_p2), %v1083_v0  ;;  %983 = vmatprep.subr.bf16.mxu1 (!%p158_p2), %v1083_v0  ;;  %vm493_vm3 = vcmask (!%p158_p2), 130048   ;;  %vm818_vm5 = vcmask (!%p158_p2), 257024  }
   0x7   : > { %979 = vmatprep.mubr.msk.bf16.mxu0 (!%p158_p2), %vm1084_vm0, %v1083_v0  ;;  %985 = vmatprep.mubr.msk.bf16.mxu1 (!%p158_p2), %vm1084_vm0, %v1083_v0  ;;  %v475_v30 = vshrl.u32 (!%p158_p2), %v474_v29, 7  ;;  %v478_v31 = vand.u32 (!%p158_p2), 127, %v474_v29 }
   0x9   : > { %v476_v32 = vadd.s32 (!%p158_p2), 8, %v475_v30  ;;  %vm479_vm2 = vcmp.gt.s32.totalorder (!%p158_p2), %v478_v31, %v475_v30 }
   0xb   : > { %vm480_vm4 = vcmp.gt.s32.totalorder (!%p158_p2), %v478_v31, %v476_v32 }
   0xd   : > { %s1223_s13 = smov (!%p191_p3, %s906_s13), 1 }
   0xe   : > { %s1119_s14 = sshll.u32 %s1223_s13, 5 }
   0xf   : > { %s200_s17 = scalar_lea.vmem %s1219_s1, %s1119_s14  ;;  %s195_s20 = scalar_lea.vmem %s1218_s0, %s1119_s14 }
  0x10   : > { %v1035_v1 = vld [vmem:[%s200_s17] sm:$0xff]   ;;  %v1036_v2 = vld [vmem:[%s200_s17 + $0x8] sm:$0xff]   ;;  %v1037_v6 = vld [vmem:[%s200_s17 + $0x10] sm:$0xff]   ;;  %s1177_s23 = scalar_lea.vmem %s1220_s2, %s1119_s14  ;;  %s1197_s26 = scalar_lea.vmem %s1221_s3, %s1119_s14 }
  0x11   : > { %v260_v3 = vsel %vm255_vm1, %v1035_v1, 0  ;;  %v213_v4 = vld [vmem:[%s195_s20] sm:$0xf]  ;;  %v214_v5 = vld [vmem:[%s195_s20 + $0x4] sm:$0xf]  ;;  %v317_v7 = vsel %vm255_vm1, %v1036_v2, 0 }
  0x12   : > { %978 = vmatpush3.bf16.xpose.msra.mxu0 %v260_v3  ;;  %v221_v8 = vmul.bf16 1043676725, %v213_v4  ;;  %v222_v9 = vmul.bf16 1043676725, %v214_v5  ;;  %v1038_v10 = vld [vmem:[%s200_s17 + $0x18] sm:$0xff]   ;;  %984 = vmatpush3.bf16.xpose.msra.mxu1 %v317_v7  ;;  %v374_v19 = vsel %vm255_vm1, %v1037_v6, 0 }
  0x13   : > { %v215_v11 = vld [vmem:[%s195_s20 + $0x8] sm:$0xf]  ;;  %v216_v12 = vld [vmem:[%s195_s20 + $0xc] sm:$0xf]  ;;  %989 = vmatprep.subr.bf16.mxu0 %v1083_v0  ;;  %995 = vmatprep.subr.bf16.mxu1 %v1083_v0  ;;  %v217_v17 = vld [vmem:[%s195_s20 + $0x10] sm:$0xf] }
  0x14   : > { %v223_v13 = vmul.bf16 1043676725, %v215_v11  ;;  %v224_v14 = vmul.bf16 1043676725, %v216_v12  ;;  %v919_v15 = vcombine.low %v221_v8, %v222_v9  ;;  %v218_v18 = vld [vmem:[%s195_s20 + $0x14] sm:$0xf] }
  0x15   : > { %v219_v20 = vld [vmem:[%s195_s20 + $0x18] sm:$0xf]  ;;  %v220_v21 = vld [vmem:[%s195_s20 + $0x1c] sm:$0xf]  ;;  %v431_v22 = vsel %vm255_vm1, %v1038_v10, 0 }
  0x16   : > { %v922_v16 = vcombine.low %v223_v13, %v224_v14  ;;  %v225_v23 = vmul.bf16 1043676725, %v217_v17  ;;  %v226_v24 = vmul.bf16 1043676725, %v218_v18  ;;  %v227_v25 = vmul.bf16 1043676725, %v219_v20 }
  0x17   : > { %v228_v26 = vmul.bf16 1043676725, %v220_v21 }
  0x18   : > { %v925_v27 = vcombine.low %v225_v23, %v226_v24 }
  0x19   : > { %980 = vmatmul.mubr.msk.bf16.vlgmr.msra.gmra.mrb[0].mxu0 %vm255_vm1, %v919_v15  ;;  %986 = vmatmul.mubr.msk.bf16.vlgmr.msra.gmra.mrb[0].mxu1 %vm255_vm1, %v922_v16  ;;  %v928_v28 = vcombine.low %v227_v25, %v228_v26 }
  0x1a   : > { %990 = vmatpush3.bf16.xpose.msra.mxu0 %v374_v19  ;;  %996 = vmatpush3.bf16.xpose.msra.mxu1 %v431_v22 }
  0x1b   : > { %991 = vmatprep.mubr.msk.bf16.mxu0 %vm1084_vm0, %v1083_v0  ;;  %997 = vmatprep.mubr.msk.bf16.mxu1 %vm1084_vm0, %v1083_v0 }
  0x1c   : > { %1001 = vmatprep.subr.bf16.mxu0 %v1083_v0  ;;  %1007 = vmatprep.subr.bf16.mxu1 %v1083_v0 }
  0x21   : > { %992 = vmatmul.mubr.msk.bf16.vlgmr.msra.gmra.mrb[4].mxu0 %vm255_vm1, %v925_v27  ;;  %998 = vmatmul.mubr.msk.bf16.vlgmr.msra.gmra.mrb[4].mxu1 %vm255_vm1, %v928_v28 }
  0x22   : > { %1003 = vmatprep.mubr.msk.bf16.mxu0 %vm1084_vm0, %v1083_v0  ;;  %1009 = vmatprep.mubr.msk.bf16.mxu1 %vm1084_vm0, %v1083_v0 }
  0xec   : > { %v296_v33 = vpop.f32.mrb[0].mxu0  ;;  %v353_v35 = vpop.f32.mrb[0].mxu1 }
  0xed   : > { %v485_v34 = vsel %vm479_vm2, -1e+30, %v296_v33  ;;  %v981_v36 = vpop.f32.mrb[1].mxu0  ;;  %v487_v37 = vsel %vm479_vm2, -1e+30, %v353_v35  ;;  %v987_v39 = vpop.f32.mrb[1].mxu1 }
  0xee   : > { %v299_v38 = vpop.f32.mrb[2].mxu0  ;;  %v494_v40 = vsel %vm493_vm3, %v485_v34, -inf  ;;  %v500_v42 = vsel %vm493_vm3, %v487_v37, -inf  ;;  %v356_v43 = vpop.f32.mrb[2].mxu1 }
  0xef   : > { %v486_v41 = vsel %vm480_vm4, -1e+30, %v299_v38  ;;  %495 = vmax.xlane.f32.xlu0 %v494_v40  ;;  %v982_v44 = vpop.f32.mrb[3].mxu0  ;;  %501 = vmax.xlane.f32.xlu1 %v500_v42  ;;  %v488_v45 = vsel %vm480_vm4, -1e+30, %v356_v43  ;;  %v988_v46 = vpop.f32.mrb[3].mxu1 }
  0xf0   : > { %v503_v47 = vsel %vm493_vm3, %v488_v45, -inf  ;;  %v497_v48 = vsel %vm493_vm3, %v486_v41, -inf  ;;  %v1039_v42 = vld [vmem:[%s1177_s23] sm:$0xff]   ;;  %v1040_v43 = vld [vmem:[%s1177_s23 + $0x8] sm:$0xff]  }
  0xf1   : > { %1002 = vmatpush3.bf16.msra.mxu0 %v1039_v42  ;;  %1008 = vmatpush3.bf16.msra.mxu1 %v1040_v43 }
  0xf2   : > { %1013 = vmatprep.subr.bf16.mxu0 %v1083_v0  ;;  %1019 = vmatprep.subr.bf16.mxu1 %v1083_v0 }
  0xf3   : > { %498 = vmax.xlane.f32.xlu0 %v497_v48  ;;  %504 = vmax.xlane.f32.xlu1 %v503_v47 }
  0xf4   : > { %v410_v49 = vpop.f32.mrb[4].mxu0  ;;  %v467_v52 = vpop.f32.mrb[4].mxu1 }
  0xf5   : > { %v489_v50 = vsel %vm479_vm2, -1e+30, %v410_v49  ;;  %v993_v51 = vpop.f32.mrb[5].mxu0  ;;  %v491_v54 = vsel %vm479_vm2, -1e+30, %v467_v52  ;;  %v999_v56 = vpop.f32.mrb[5].mxu1 }
  0xf6   : > { %v413_v53 = vpop.f32.mrb[6].mxu0  ;;  %v506_v55 = vsel %vm493_vm3, %v489_v50, -inf  ;;  %v470_v59 = vpop.f32.mrb[6].mxu1  ;;  %v512_v63 = vsel %vm493_vm3, %v491_v54, -inf }
  0xf7   : > { %v490_v57 = vsel %vm480_vm4, -1e+30, %v413_v53  ;;  %507 = vmax.xlane.f32.xlu0 %v506_v55  ;;  %v994_v58 = vpop.f32.mrb[7].mxu0  ;;  %v492_v60 = vsel %vm480_vm4, -1e+30, %v470_v59  ;;  %v1000_v62 = vpop.f32.mrb[7].mxu1 }
  0xf8   : > { %v509_v61 = vsel %vm493_vm3, %v490_v57, -inf  ;;  %v515_v1 = vsel %vm493_vm3, %v492_v60, -inf }
  0xf9   : > { %510 = vmax.xlane.f32.xlu1 %v509_v61 }
  0xfb   : > { %513 = vmax.xlane.f32.xlu0 %v512_v63  ;;  %v1042_v63 = vld [vmem:[%s1177_s23 + $0x18] sm:$0xff]  }
  0xfd   : > { %516 = vmax.xlane.f32.xlu1 %v515_v1 }
 0x17c   : > { %v496_v2 = vpop.xlane.xlu0 %495  ;;  %v502_v3 = vpop.xlane.xlu1 %501 }
 0x17d   : > { %v518_v4 = vsub.f32 %v485_v34, %v496_v2  ;;  %v520_v5 = vsub.f32 %v487_v37, %v502_v3 }
 0x17f   : > { %v526_v6 = vmul.f32 1.442695, %v518_v4  ;;  %v530_v7 = vmul.f32 1.442695, %v520_v5 }
 0x180   : > { %v499_v8 = vpop.xlane.xlu0 %498  ;;  %v505_v9 = vpop.xlane.xlu1 %504 }
 0x181   : > { %1043 = vpow2.f32 %v526_v6  ;;  %v519_v10 = vsub.f32 %v486_v41, %v499_v8  ;;  %v521_v11 = vsub.f32 %v488_v45, %v505_v9 }
 0x182   : > { %1045 = vpow2.f32 %v530_v7 }
 0x183   : > { %v528_v12 = vmul.f32 1.442695, %v519_v10  ;;  %v532_v13 = vmul.f32 1.442695, %v521_v11 }
 0x184   : > { %v508_v14 = vpop.xlane.xlu0 %507 }
 0x185   : > { %1047 = vpow2.f32 %v528_v12  ;;  %v522_v15 = vsub.f32 %v489_v50, %v508_v14 }
 0x186   : > { %v511_v16 = vpop.xlane.xlu1 %510  ;;  %1049 = vpow2.f32 %v532_v13 }
 0x187   : > { %v534_v17 = vmul.f32 1.442695, %v522_v15  ;;  %v523_v18 = vsub.f32 %v490_v57, %v511_v16  ;;  %v1041_v57 = vld [vmem:[%s1177_s23 + $0x10] sm:$0xff]  }
 0x188   : > { %v514_v19 = vpop.xlane.xlu0 %513 }
 0x189   : > { %1051 = vpow2.f32 %v534_v17  ;;  %v536_v20 = vmul.f32 1.442695, %v523_v18  ;;  %v524_v21 = vsub.f32 %v491_v54, %v514_v19 }
 0x18a   : > { %v517_v22 = vpop.xlane.xlu1 %516 }
 0x18b   : > { %v1044_v23 = vpop.eup %1043  ;;  %1053 = vpow2.f32 %v536_v20  ;;  %v538_v24 = vmul.f32 1.442695, %v524_v21  ;;  %v525_v25 = vsub.f32 %v492_v60, %v517_v22 }
 0x18c   : > { %v542_v26 = vsel %vm493_vm3, %v1044_v23, 0.0  ;;  %v1046_v27 = vpop.eup %1045 }
 0x18d   : > { %1055 = vpow2.f32 %v538_v24  ;;  %v540_v28 = vmul.f32 1.442695, %v525_v25  ;;  %543 = vadd.xlane.f32.xlu0 %v542_v26  ;;  %v548_v30 = vsel %vm493_vm3, %v1046_v27, 0.0 }
 0x18f   : > { %v1048_v29 = vpop.eup %1047  ;;  %1057 = vpow2.f32 %v540_v28 }
 0x190   : > { %v545_v31 = vsel %vm493_vm3, %v1048_v29, 0.0  ;;  %v1050_v32 = vpop.eup %1049 }
 0x191   : > { %549 = vadd.xlane.f32.xlu0 %v548_v30  ;;  %546 = vadd.xlane.f32.xlu1 %v545_v31  ;;  %v551_v35 = vsel %vm493_vm3, %v1050_v32, 0.0 }
 0x193   : > { %v1052_v33 = vpop.eup %1051 }
 0x194   : > { %v554_v34 = vsel %vm493_vm3, %v1052_v33, 0.0 }
 0x195   : > { %v1054_v36 = vpop.eup %1053  ;;  %555 = vadd.xlane.f32.xlu0 %v554_v34  ;;  %552 = vadd.xlane.f32.xlu1 %v551_v35 }
 0x196   : > { %v557_v39 = vsel %vm493_vm3, %v1054_v36, 0.0 }
 0x197   : > { %v1056_v37 = vpop.eup %1055 }
 0x198   : > { %v560_v38 = vsel %vm493_vm3, %v1056_v37, 0.0 }
 0x199   : > { %v1058_v40 = vpop.eup %1057  ;;  %561 = vadd.xlane.f32.xlu0 %v560_v38  ;;  %558 = vadd.xlane.f32.xlu1 %v557_v39 }
 0x19a   : > { %v563_v41 = vsel %vm493_vm3, %v1058_v40, 0.0 }
 0x19d   : > { %564 = vadd.xlane.f32.xlu1 %v563_v41 }
 0x21a   : > { %v544_v44 = vpop.xlane.xlu0 %543 }
 0x21b   : > { %1059 = vrcp.f32 %v544_v44 }
 0x21e   : > { %v550_v45 = vpop.xlane.xlu0 %549  ;;  %v547_v46 = vpop.xlane.xlu1 %546 }
 0x21f   : > { %1061 = vrcp.f32 %v547_v46 }
 0x220   : > { %1063 = vrcp.f32 %v550_v45 }
 0x222   : > { %v556_v47 = vpop.xlane.xlu0 %555  ;;  %v553_v48 = vpop.xlane.xlu1 %552 }
 0x223   : > { %1065 = vrcp.f32 %v553_v48 }
 0x224   : > { %1067 = vrcp.f32 %v556_v47 }
 0x225   : > { %v1060_v51 = vpop.eup %1059 }
 0x226   : > { %v562_v49 = vpop.xlane.xlu0 %561  ;;  %v559_v50 = vpop.xlane.xlu1 %558  ;;  %v574_v54 = vmul.f32 %v1060_v51, %v1044_v23 }
 0x227   : > { %1069 = vrcp.f32 %v559_v50 }
 0x228   : > { %1071 = vrcp.f32 %v562_v49 }
 0x229   : > { %v1062_v52 = vpop.eup %1061 }
 0x22a   : > { %v565_v53 = vpop.xlane.xlu1 %564  ;;  %v575_v55 = vmul.f32 %v1062_v52, %v1048_v29  ;;  %v1064_v56 = vpop.eup %1063 }
 0x22b   : > { %1073 = vrcp.f32 %v565_v53  ;;  %v576_v60 = vmul.f32 %v1064_v56, %v1046_v27 }
 0x22c   : > { %v582_v58 = vpack.c.bf16 %v575_v55, %v574_v54 }
 0x22d   : > { %v1066_v59 = vpop.eup %1065 }
 0x22e   : > { %v577_v61 = vmul.f32 %v1066_v59, %v1050_v32  ;;  %1004 = vmatmul.mubr.msk.bf16.vlgmr.msra.gmra.mrb[8].mxu0 %vm493_vm3, %v582_v58  ;;  %v1068_v62 = vpop.eup %1067 }
 0x22f   : > { %1014 = vmatpush3.bf16.msra.mxu0 %v1041_v57  ;;  %1015 = vmatprep.mubr.msk.bf16.mxu0 %vm1084_vm0, %v1083_v0  ;;  %v578_v4 = vmul.f32 %v1068_v62, %v1052_v33 }
 0x230   : > { %v583_v1 = vpack.c.bf16 %v577_v61, %v576_v60 }
 0x231   : > { %v1070_v2 = vpop.eup %1069 }
 0x232   : > { %v1072_v3 = vpop.eup %1071  ;;  %v579_v5 = vmul.f32 %v1070_v2, %v1054_v36  ;;  %1010 = vmatmul.mubr.msk.bf16.vlgmr.msra.gmra.mrb[8].mxu1 %vm493_vm3, %v583_v1 }
 0x233   : > { %1020 = vmatpush3.bf16.msra.mxu1 %v1042_v63  ;;  %1021 = vmatprep.mubr.msk.bf16.mxu1 %vm1084_vm0, %v1083_v0  ;;  %v580_v8 = vmul.f32 %v1072_v3, %v1056_v37 }
 0x234   : > { %v584_v7 = vpack.c.bf16 %v579_v5, %v578_v4 }
 0x235   : > { %v1074_v6 = vpop.eup %1073 }
 0x236   : > { %v581_v9 = vmul.f32 %v1074_v6, %v1058_v40  ;;  %1016 = vmatmul.mubr.msk.bf16.vlgmr.msra.gmra.mrb[12].mxu0 %vm493_vm3, %v584_v7 }
 0x238   : > { %v585_v10 = vpack.c.bf16 %v581_v9, %v580_v8 }
 0x23a   : > { %1022 = vmatmul.mubr.msk.bf16.vlgmr.msra.gmra.mrb[12].mxu1 %vm493_vm3, %v585_v10 }
 0x301   : > { %v629_v11 = vpop.f32.mrb[8].mxu0 }
 0x302   : > { %v953_v0 = vpack.c.bf16 %v629_v11, %v629_v11  ;;  %v1005_v12 = vpop.f32.mrb[9].mxu0 }
 0x303   : > { %v632_v13 = vpop.f32.mrb[10].mxu0 }
 0x304   : > { %819 = vst.msk [vmem:[%s1197_s26] sm:$0xf] %vm818_vm5, %v953_v0  ;;  %v954_v14 = vpack.c.bf16 %v632_v13, %v632_v13  ;;  %v1006_v15 = vpop.f32.mrb[11].mxu0 }
 0x305   : > { %v679_v16 = vpop.f32.mrb[8].mxu1 }
 0x306   : > { %820 = vst.msk [vmem:[%s1197_s26 + $0x4] sm:$0xf] %vm818_vm5, %v954_v14  ;;  %v955_v17 = vpack.c.bf16 %v679_v16, %v679_v16  ;;  %v1011_v18 = vpop.f32.mrb[9].mxu1 }
 0x307   : > { %v682_v19 = vpop.f32.mrb[10].mxu1 }
 0x308   : > { %821 = vst.msk [vmem:[%s1197_s26 + $0x8] sm:$0xf] %vm818_vm5, %v955_v17  ;;  %v956_v20 = vpack.c.bf16 %v682_v19, %v682_v19  ;;  %v1012_v21 = vpop.f32.mrb[11].mxu1 }
 0x309   : > { %v729_v22 = vpop.f32.mrb[12].mxu0 }
 0x30a   : > { %822 = vst.msk [vmem:[%s1197_s26 + $0xc] sm:$0xf] %vm818_vm5, %v956_v20  ;;  %v957_v23 = vpack.c.bf16 %v729_v22, %v729_v22  ;;  %v1017_v24 = vpop.f32.mrb[13].mxu0 }
 0x30b   : > { %v732_v25 = vpop.f32.mrb[14].mxu0 }
 0x30c   : > { %823 = vst.msk [vmem:[%s1197_s26 + $0x10] sm:$0xf] %vm818_vm5, %v957_v23  ;;  %v958_v26 = vpack.c.bf16 %v732_v25, %v732_v25  ;;  %v1018_v27 = vpop.f32.mrb[15].mxu0 }
 0x30d   : > { %v779_v28 = vpop.f32.mrb[12].mxu1 }
 0x30e   : > { %824 = vst.msk [vmem:[%s1197_s26 + $0x14] sm:$0xf] %vm818_vm5, %v958_v26  ;;  %v959_v29 = vpack.c.bf16 %v779_v28, %v779_v28  ;;  %v1023_v30 = vpop.f32.mrb[13].mxu1 }
 0x30f   : > { %v782_v31 = vpop.f32.mrb[14].mxu1 }
 0x310   : > { %825 = vst.msk [vmem:[%s1197_s26 + $0x18] sm:$0xf] %vm818_vm5, %v959_v29  ;;  %v960_v32 = vpack.c.bf16 %v782_v31, %v782_v31  ;;  %v1024_v33 = vpop.f32.mrb[15].mxu1 }
 0x312   : > { %826 = vst.msk [vmem:[%s1197_s26 + $0x1c] sm:$0xf] %vm818_vm5, %v960_v32 }
 0x313 PF: > { %s13_s12 = sadd.s32 1, %s1081_s12  }
 0x314   : > { %p10_p4 = scmp.ge.s32.totalorder %s13_s12, 4  }
 0x316   :  { %12 = sbr.rel (!%p10_p4) target bundleno = 1 (0x1), region = 68 }

// kernel: gpt2_forward.19
= control target key start
LH: loop header
LB: loop body
LE: loop exit
PB: predicated region body
PF: predicated region fallthrough
CT: control target
= control target key end

     0   :  { %7 = vsyncpa [#allocation4], 0  ;;  %s892_s0 = inlined_call_operand.vmem [shape: bf16[32,128], index: 0, kind: input, shape index: {}]   ;;  %s893_s1 = inlined_call_operand.vmem [shape: bf16[128,256], index: 1, kind: input, shape index: {}]   ;;  %s894_s2 = inlined_call_operand.hbm [shape: f32[32,256], index: 2, kind: output, shape index: {}]  }
   0x1   :  { %9 = vsyncpa [#allocation4 + $0x1], 0  ;;  %s744_s9 = smov 0   ;;  %s746_s10 = smov 0  }
   0x2   :  { %s748_s11 = smov 0   ;;  %s750_s12 = smov 0  }
   0x3   :  { %s752_s13 = smov 0   ;;  %s754_s14 = smov 0  }
   0x4 LB: > { %s523_s15 = sadd.s32 4294967295, %s723_s14   ;;  %s524_s16 = sadd.s32 4294967294, %s723_s14   ;;  %s723_s14 = sphi %s754_s14, %s15_s14   ;;  %s719_s13 = sphi %s752_s13, %s901_s13   ;;  %s715_s12 = sphi %s750_s12, %s900_s12   ;;  %s711_s11 = sphi %s748_s11, %s899_s11   ;;  %s707_s10 = sphi %s746_s10, %s898_s10   ;;  %s703_s9 = sphi %s744_s9, %s897_s9  }
   0x5   : > { %s24_s17 = sadd.s32 1, %s719_s13  ;;  %s60_s18 = sadd.s32 1, %s711_s11 }
   0x6   : > { %p25_p0 = scmp.ge.s32.totalorder %s24_s17, 2  ;;  %p67_p1 = scmp.ne.s32.totalorder %s711_s11, %s707_s10 }
   0x7   : > { %p68_p2 = scmp.eq.s32.totalorder %s723_s14, 0  ;;  %p99_p3 = scmp.eq.s32.totalorder %s523_s15, 1 }
   0x8   : > { %s903_s17 = smov (%p25_p0, %s24_s17), 0  ;;  %p104_p6 = scmp.ne.s32.totalorder %s707_s10, %s703_s9 }
   0x9   : > { %p69_p4 = por %p68_p2, %p67_p1  ;;  %p783_p5 = por %p99_p3, %p67_p1 }
   0xa   : > { %s57_s20 = ssub.s32 %s719_s13, %s903_s17  ;;  %p105_p8 = scmp.eq.s32.totalorder %s524_s16, 1 }
   0xb   : > { %p58_p7 = scmp.eq.s32.totalorder %s57_s20, 0  ;;  %p527_p10 = scmp.ge.s32.totalorder %s723_s14, 2 }
   0xc   : > { %p794_p9 = por %p105_p8, %p104_p6 }
   0xd   : > { %s792_s21 = scalar_select %p58_p7, %s711_s11, %s60_s18  }
   0xe   : > { %130 = sbr.rel (%p527_p10) target bundleno = 35 (0x23), region = 20 }
  0x15   : > { %133 = sbr.rel (!%p69_p4) target bundleno = 35 (0x23), region = 24  ;;  %s135_s23 = sand.u32 (%p69_p4), 1, %s711_s11  }
  0x16   : > { %s529_s24 = sshll.u32 (%p69_p4), %s719_s13, 2  ;;  %s528_s25 = sshll.u32 (%p69_p4), %s135_s23, 6 }
  0x17   : > { %s806_s28 = scalar_lea.vmem (%p69_p4), %s893_s1, %s529_s24  ;;  %s137_s29 = scalar_lea.vmem (%p69_p4), [#allocation2], %s528_s25 }
  0x18   : > { %v155_v0 = vld [vmem:[%s806_s28] sm:$0xf] (%p69_p4)  ;;  %v157_v1 = vld [vmem:[%s806_s28 + $0x8] sm:$0xf] (%p69_p4)  ;;  %v159_v2 = vld [vmem:[%s806_s28 + $0x10] sm:$0xf] (%p69_p4) }
  0x19   : > { %156 = vst [vmem:[%s137_s29] sm:$0xf] (%p69_p4), %v155_v0  ;;  %158 = vst [vmem:[%s137_s29 + $0x4] sm:$0xf] (%p69_p4), %v157_v1  ;;  %v161_v3 = vld [vmem:[%s806_s28 + $0x18] sm:$0xf] (%p69_p4) }
  0x1a   : > { %v163_v4 = vld [vmem:[%s806_s28 + $0x20] sm:$0xf] (%p69_p4)  ;;  %160 = vst [vmem:[%s137_s29 + $0x8] sm:$0xf] (%p69_p4), %v159_v2  ;;  %162 = vst [vmem:[%s137_s29 + $0xc] sm:$0xf] (%p69_p4), %v161_v3 }
  0x1b   : > { %164 = vst [vmem:[%s137_s29 + $0x10] sm:$0xf] (%p69_p4), %v163_v4  ;;  %v165_v5 = vld [vmem:[%s806_s28 + $0x28] sm:$0xf] (%p69_p4)  ;;  %v167_v6 = vld [vmem:[%s806_s28 + $0x30] sm:$0xf] (%p69_p4) }
  0x1c   : > { %v169_v7 = vld [vmem:[%s806_s28 + $0x38] sm:$0xf]  ;;  %166 = vst [vmem:[%s137_s29 + $0x14] sm:$0xf] %v165_v5  ;;  %168 = vst [vmem:[%s137_s29 + $0x18] sm:$0xf] %v167_v6 }
  0x1d   : > { %170 = vst [vmem:[%s137_s29 + $0x1c] sm:$0xf] %v169_v7  ;;  %v171_v8 = vld [vmem:[%s806_s28 + $0x40] sm:$0xf]  ;;  %v173_v9 = vld [vmem:[%s806_s28 + $0x48] sm:$0xf] }
  0x1e   : > { %v175_v10 = vld [vmem:[%s806_s28 + $0x50] sm:$0xf]  ;;  %172 = vst [vmem:[%s137_s29 + $0x20] sm:$0xf] %v171_v8  ;;  %174 = vst [vmem:[%s137_s29 + $0x24] sm:$0xf] %v173_v9 }
  0x1f   : > { %176 = vst [vmem:[%s137_s29 + $0x28] sm:$0xf] %v175_v10  ;;  %v177_v11 = vld [vmem:[%s806_s28 + $0x58] sm:$0xf]  ;;  %v179_v12 = vld [vmem:[%s806_s28 + $0x60] sm:$0xf] }
  0x20   : > { %v181_v13 = vld [vmem:[%s806_s28 + $0x68] sm:$0xf]  ;;  %178 = vst [vmem:[%s137_s29 + $0x2c] sm:$0xf] %v177_v11  ;;  %180 = vst [vmem:[%s137_s29 + $0x30] sm:$0xf] %v179_v12 }
  0x21   : > { %182 = vst [vmem:[%s137_s29 + $0x34] sm:$0xf] %v181_v13  ;;  %v183_v14 = vld [vmem:[%s806_s28 + $0x70] sm:$0xf]  ;;  %v185_v15 = vld [vmem:[%s806_s28 + $0x78] sm:$0xf] }
  0x22   : > { %184 = vst [vmem:[%s137_s29 + $0x38] sm:$0xf] %v183_v14  ;;  %186 = vst [vmem:[%s137_s29 + $0x3c] sm:$0xf] %v185_v15 }
  0x23 PF: > { %p530_p11 = scmp.ge.s32.totalorder %s723_s14, 1  ;;  %p240_p12 = scmp.lt.s32.totalorder %s723_s14, 3 }
  0x25   : > { %p241_p13 = pnand %p530_p11, %p240_p12 }
  0x26   : > { %s827_s30 = sand.u32 (!%p241_p13), 1, %s707_s10   ;;  %v643_v16 = vld [vmem:[%s892_s0] sm:$0xff] (!%p241_p13)   ;;  %v644_v25 = vld [vmem:[%s892_s0 + $0x8] sm:$0xff] (!%p241_p13)   ;;  %s544_s20 = sshll.u32 (!%p241_p13), %s715_s12, 7 }
  0x27   : > { %244 = sbr.rel (%p241_p13) target bundleno = 305 (0x131), region = 65  ;;  %s531_s5 = sshll.u32 (!%p241_p13), %s827_s30, 6  ;;  %573 = vmatprep.mubr.bf16.mxu0 (!%p241_p13), %v643_v16 }
  0x28   : > { %s249_s6 = scalar_lea.vmem (!%p241_p13), [#allocation2], %s531_s5  ;;  %s532_s15 = sshll.u32 (!%p241_p13), %s827_s30, 5 }
  0x29   : > { %v635_v17 = vld [vmem:[%s249_s6] sm:$0xff] (!%p241_p13)   ;;  %v636_v18 = vld [vmem:[%s249_s6 + $0x8] sm:$0xff] (!%p241_p13)   ;;  %v637_v19 = vld [vmem:[%s249_s6 + $0x10] sm:$0xff] (!%p241_p13)   ;;  %s272_s16 = scalar_lea.vmem (!%p241_p13), [#allocation3], %s532_s15  ;;  %s843_s25 = scalar_lea.hbm (!%p241_p13), %s894_s2, %s544_s20 }
  0x2a   : > { %557 = vmatprep.subr.bf16.mxu0 (!%p241_p13), %v635_v17  ;;  %v638_v20 = vld [vmem:[%s249_s6 + $0x18] sm:$0xff] (!%p241_p13)   ;;  %v639_v21 = vld [vmem:[%s249_s6 + $0x20] sm:$0xff] (!%p241_p13)   ;;  %v640_v22 = vld [vmem:[%s249_s6 + $0x28] sm:$0xff] (!%p241_p13)   ;;  %s430_s18 = sshll.u32 (!%p241_p13), %s272_s16, 4  ;;  %s415_s26 = scalar_lea.sflag (!%p241_p13), [#allocation4], %s827_s30  ;;  %s838_s18 = int_to_ptr.vmem [resolvable:$true] %s430_s18 }
  0x2b   : > { %558 = vmatpush3.bf16.msra.mxu0 (!%p241_p13), %v635_v17  ;;  %v641_v23 = vld [vmem:[%s249_s6 + $0x30] sm:$0xff] (!%p241_p13)   ;;  %v642_v24 = vld [vmem:[%s249_s6 + $0x38] sm:$0xff] (!%p241_p13)   ;;  %s645_s12 = scalar_lea.vmem (!%p241_p13), %s838_s18, 512  ;;  %s725_s27 = smov (!%p241_p13), [#allocation3]  }
  0x2c   : > { %559 = vmatprep.subr.bf16.mxu0 (!%p241_p13), %v636_v18  ;;  %p646_p0 = scmp.ne.s32.totalorder (!%p241_p13), %s838_s18, %s645_s12  ;;  %s649_s28 = sshll.u32 (!%p241_p13), %s725_s27, 4  ;;  %s650_s28 = int_to_ptr.vmem [resolvable:$false] %s649_s28 }
  0x2d   : > { %s651_s29 = scalar_lea.vmem (!%p241_p13), %s650_s28, 1024  ;;  %p652_p3 = scmp.lt.s32.totalorder (!%p241_p13), %s838_s18, %s650_s28 }
  0x2e   : > { %p647_p1 = pnand %p646_p0, %p783_p5  ;;  %p653_p4 = scmp.lt.s32.totalorder %s651_s29, %s645_s12 }
  0x2f   : > { %560 = vmatpush3.bf16.msra.mxu0 %v636_v18 }
  0x30   : > { %561 = vmatprep.subr.bf16.mxu0 %v637_v19  ;;  %p648_p2 = pneg %p647_p1  ;;  %p654_p6 = por %p653_p4, %p652_p3 }
  0x32   : > { %p655_p7 = pnand %p654_p6, %p648_p2 }
  0x33   : > { %562 = vmatpush3.bf16.msra.mxu0 %v637_v19 }
  0x34   : > { %563 = vmatprep.subr.bf16.mxu0 %v638_v20 }
  0x37   : > { %564 = vmatpush3.bf16.msra.mxu0 %v638_v20 }
  0x38   : > { %565 = vmatprep.subr.bf16.mxu0 %v639_v21 }
  0x3b   : > { %566 = vmatpush3.bf16.msra.mxu0 %v639_v21 }
  0x3c   : > { %567 = vmatprep.subr.bf16.mxu0 %v640_v22 }
  0x3f   : > { %568 = vmatpush3.bf16.msra.mxu0 %v640_v22 }
  0x40   : > { %569 = vmatprep.subr.bf16.mxu0 %v641_v23 }
  0x43   : > { %570 = vmatpush3.bf16.msra.mxu0 %v641_v23 }
  0x44   : > { %571 = vmatprep.subr.bf16.mxu0 %v642_v24 }
  0x47   : > { %572 = vmatpush3.bf16.msra.mxu0 %v642_v24 }
  0x4a   : > { %574 = vmatmul.mubr.bf16.vlgmr.msra.gmra.mrb[0].mxu0 %v644_v25 }
 0x11d   : > { %v575_v26 = vpop.f32.mrb[0].mxu0 }
 0x11e   : > { %412 = vst [vmem:[%s272_s16 + $0x10] sm:$0xff] %v575_v26  ;;  %v395_v27 = vpop.f32.mrb[1].mxu0 }
 0x11f   : > { %410 = vst [vmem:[%s272_s16] sm:$0xff] %v395_v27  ;;  %v576_v28 = vpop.f32.mrb[2].mxu0 }
 0x120   : > { %413 = vst [vmem:[%s272_s16 + $0x18] sm:$0xff] %v576_v28  ;;  %v398_v29 = vpop.f32.mrb[3].mxu0 }
 0x121   : > { %411 = vst [vmem:[%s272_s16 + $0x8] sm:$0xff] %v398_v29 }
 0x122   : > { %658 = shalt.err (!%p655_p7)
}
 0x123   : > { %s659_s3 = scalar_lea.hbm %s843_s25, 512  ;;  %s663_s6 = scalar_lea.hbm %s894_s2, 1024 }
 0x124   : > { %p660_p8 = scmp.ne.s32.totalorder %s843_s25, %s659_s3  ;;  %p664_p13 = scmp.lt.u32.totalorder %s843_s25, %s894_s2 }
 0x125   : > { %p665_p0 = scmp.lt.u32.totalorder %s663_s6, %s659_s3  ;;  %p667_p2 = scmp.lt.u32.totalorder %s659_s3, %s843_s25 }
 0x126   : > { %p661_p11 = pnand %p660_p8, %p783_p5 }
 0x127   : > { %p666_p1 = por %p665_p0, %p664_p13 }
 0x128   : > { %p662_p12 = pneg %p661_p11 }
 0x129   : > { %p668_p3 = por %p667_p2, %p666_p1 }
 0x12b   : > { %p669_p4 = pnand %p668_p3, %p662_p12 }
 0x12d   : > { %672 = shalt.err (!%p669_p4)
}
 0x12e   : > { %s726_s15 = smov 128   ;;  %s727_s16 = smov 256  }
 0x12f   : > { %s728_s20 = smov 8  }
 0x130   : > { %577 = dma.vmem_to_hbm [thread:$0]  (%p783_p5), %s838_s18, 512, %s843_s25, %s415_s26, %s726_s15, %s727_s16, %s728_s20  }
 0x131 PF: > { %s445_s23 = sand.u32 1, %s703_s9   ;;  %p580_p6 = pnand %p527_p10, %p794_p9 }
 0x132   : > { %s446_s24 = scalar_lea.sflag [#allocation4], %s445_s23 }
 0x133   : > { %698 = dma.done.wait (!%p580_p6), %s446_s24, 512  }
 0x134   : > { %700 = vsyncadd (!%p580_p6), %s446_s24, 4294966784  ;;  %s15_s14 = sadd.s32 1, %s723_s14   ;;  %s897_s9 = smov %s707_s10 }
 0x135   : > { %p12_p7 = scmp.ge.s32.totalorder %s15_s14, 4   ;;  %s898_s10 = smov %s711_s11 }
 0x136   : > { %s899_s11 = smov %s792_s21  ;;  %s900_s12 = smov %s719_s13 }
 0x137   : > { %s901_s13 = smov %s903_s17  ;;  %14 = sbr.rel (!%p12_p7) target bundleno = 4 (0x4), region = 112 }
 0x13e   :  { %451 = vsyncpa [#allocation4], 1 }
 0x13f   :  { %453 = vsyncpa [#allocation4 + $0x1], 1 }

// kernel: gpt2_forward.18
= control target key start
LH: loop header
LB: loop body
LE: loop exit
PB: predicated region body
PF: predicated region fallthrough
CT: control target
= control target key end

     0   :  { %s351_s12 = smov 0   ;;  %s381_s0 = inlined_call_operand.vmem [shape: bf16[32,128], index: 0, kind: input, shape index: {}]   ;;  %s382_s1 = inlined_call_operand.vmem [shape: f32[1,128], index: 1, kind: input, shape index: {}]   ;;  %s383_s2 = inlined_call_operand.vmem [shape: f32[1,128], index: 2, kind: input, shape index: {}]   ;;  %s384_s3 = inlined_call_operand.vmem [shape: bf16[32,128], index: 3, kind: output, shape index: {}]  }
   0x1 LB: > { %s285_s13 = sadd.s32 4294967295, %s329_s12   ;;  %p289_p0 = scmp.ge.s32.totalorder %s329_s12, 1  ;;  %s329_s12 = sphi %s351_s12, %s13_s12  }
   0x2   : > { %p138_p1 = scmp.lt.s32.totalorder %s329_s12, 3 }
   0x4   : > { %p139_p2 = pnand %p289_p0, %p138_p1 }
   0x5   : > { %s290_s14 = sshll.u32 (!%p139_p2), %s285_s13, 1  ;;  %v294_v19 = vld [vmem:[%s382_s1] ss:$0 sm:$0xff] (!%p139_p2) }
   0x6   : > { %142 = sbr.rel (%p139_p2) target bundleno = 337 (0x151), region = 32  ;;  %p163_p3 = scmp.lt.s32.totalorder (!%p139_p2), %s290_s14, 3  ;;  %v295_v23 = vld [vmem:[%s383_s2] ss:$0 sm:$0xff] (!%p139_p2) }
   0xd   : > { %s386_s14 = smov (!%p163_p3, %s290_s14), 3 }
   0xe   : > { %s291_s15 = sshll.u32 %s386_s14, 2 }
   0xf   : > { %s166_s18 = scalar_lea.vmem %s381_s0, %s291_s15  ;;  %s172_s25 = scalar_lea.vmem %s384_s3, %s291_s15 }
  0x10   : > { %v303_v0 = vld [vmem:[%s166_s18] sm:$0xff]  }
  0x11   : > { %v304_v1 = vunpack.c.l.bf16 %v303_v0  ;;  %v305_v2 = vunpack.c.h.bf16 %v303_v0 }
  0x13   : > { %180 = vadd.xlane.f32.xlu0 %v304_v1 }
  0x17   : > { %182 = vadd.xlane.f32.xlu0 %v305_v2 }
  0xa0   : > { %v181_v3 = vpop.xlane.xlu0 %180 }
  0xa1   : > { %v185_v4 = vmul.f32 0.0078125, %v181_v3 }
  0xa3   : > { %v187_v5 = vsub.f32 %v304_v1, %v185_v4 }
  0xa4   : > { %v183_v6 = vpop.xlane.xlu0 %182 }
  0xa5   : > { %v186_v7 = vmul.f32 0.0078125, %v183_v6  ;;  %v189_v8 = vmul.f32 %v187_v5, %v187_v5 }
  0xa7   : > { %v188_v9 = vsub.f32 %v305_v2, %v186_v7  ;;  %191 = vadd.xlane.f32.xlu1 %v189_v8 }
  0xa9   : > { %v190_v10 = vmul.f32 %v188_v9, %v188_v9 }
  0xab   : > { %193 = vadd.xlane.f32.xlu1 %v190_v10 }
 0x134   : > { %v192_v11 = vpop.xlane.xlu1 %191 }
 0x135   : > { %v195_v12 = vmul.f32 0.0078125, %v192_v11 }
 0x137   : > { %v197_v13 = vadd.f32 1e-05, %v195_v12 }
 0x138   : > { %v194_v14 = vpop.xlane.xlu1 %193 }
 0x139   : > { %319 = vrsqrt.f32 %v197_v13  ;;  %v196_v15 = vmul.f32 0.0078125, %v194_v14 }
 0x13b   : > { %v198_v16 = vadd.f32 1e-05, %v196_v15 }
 0x13d   : > { %321 = vrsqrt.f32 %v198_v16 }
 0x143   : > { %v320_v17 = vpop.eup %319 }
 0x144   : > { %v201_v18 = vmul.f32 %v320_v17, %v187_v5 }
 0x146   : > { %v209_v21 = vmul.f32 %v294_v19, %v201_v18 }
 0x147   : > { %v322_v20 = vpop.eup %321 }
 0x148   : > { %v202_v22 = vmul.f32 %v322_v20, %v188_v9  ;;  %v217_v25 = vadd.f32 %v295_v23, %v209_v21 }
 0x14a   : > { %v210_v24 = vmul.f32 %v294_v19, %v202_v22 }
 0x14c   : > { %v218_v26 = vadd.f32 %v295_v23, %v210_v24 }
 0x14e   : > { %v309_v27 = vpack.c.bf16 %v218_v26, %v217_v25 }
 0x150   : > { %310 = vst [vmem:[%s172_s25] sm:$0xff] %v309_v27  }
 0x151 PF: > { %s13_s12 = sadd.s32 1, %s329_s12  }
 0x152   : > { %p10_p4 = scmp.ge.s32.totalorder %s13_s12, 4  }
 0x154   :  { %12 = sbr.rel (!%p10_p4) target bundleno = 1 (0x1), region = 62 }

</bundles_post_ra>
